<compile_context>
chip_gen: v7x
topology: tpu7x:2x2x1
jax: 0.10.0
libtpu: 0.0.40
codegen_flags: <defaults>
</compile_context>

<pallas_src>
import functools

import jax
import jax.numpy as jnp
from jax.experimental import pallas as pl
from jax.experimental.pallas import tpu as pltpu


# --------------------------------------------------------------------------------------
# Kernels
# --------------------------------------------------------------------------------------

def _strided_conv_kernel(x_ref, w_ref, b_ref, o_ref, *, Ho, Wo, relu_out):
    """Conv2d(k=4, s=2, p=1) for one batch element, phase-decomposed.

    x_ref: (1, Ho+1, Wo+1, 4*Cin) space-to-depth of the pad-1 input.
    w_ref: (16*Cin, Cout) flattened weights (order matches the patch concat below).
    One im2col GEMM per grid step: (Ho*Wo, 16*Cin) @ (16*Cin, Cout).
    """
    x = x_ref[0]                                           # (Ho+1, Wo+1, 4*Cin)
    cols = []
    for a in range(2):
        for bb in range(2):
            sl = x[a:a + Ho, bb:bb + Wo, :]                # (Ho, Wo, 4*Cin)
            cols.append(sl.reshape(Ho * Wo, sl.shape[-1]))
    patches = jnp.concatenate(cols, axis=-1)               # (Ho*Wo, 16*Cin)

    acc = jnp.dot(patches, w_ref[...], preferred_element_type=jnp.float32)
    acc = acc + b_ref[...]                                 # (1, Cout) broadcast
    if relu_out:
        acc = jnp.maximum(acc, 0.0)
    o_ref[...] = acc.reshape(1, Ho, Wo, acc.shape[-1]).astype(o_ref.dtype)


def _res_layer_kernel(xp_ref, w1_ref, w2_ref, o_ref, *, H, W, relu_out):
    """Fused ResidualLayer: x + Conv1x1(ReLU(Conv3x3(ReLU(x)))), optional final ReLU.

    xp_ref: (1, H+2, W+2, C) pad-1 input (un-ReLU'd; residual uses its center).
    w1_ref: (9*C, Chid) flattened 3x3 weights; w2_ref: (Chid, C) 1x1 weights.
    """
    xp = xp_ref[0]                                         # (H+2, W+2, C)
    xr = jnp.maximum(xp, 0.0)                              # ReLU applied once (hoisted)

    cols = []
    for kh in range(3):
        for kw in range(3):
            sl = xr[kh:kh + H, kw:kw + W, :]               # (H, W, C)
            cols.append(sl.reshape(H * W, sl.shape[-1]))
    patches = jnp.concatenate(cols, axis=-1)               # (H*W, 9*C)

    t = jnp.dot(patches, w1_ref[...], preferred_element_type=jnp.float32)
    t = jnp.maximum(t, 0.0)                                # inner ReLU
    y = jnp.dot(t, w2_ref[...], preferred_element_type=jnp.float32)

    res = xp[1:1 + H, 1:1 + W, :].reshape(H * W, xp.shape[-1])
    y = y + res                                            # residual add
    if relu_out:                                           # ResidualStack's final ReLU
        y = jnp.maximum(y, 0.0)
    o_ref[...] = y.reshape(1, H, W, y.shape[-1]).astype(o_ref.dtype)


# --------------------------------------------------------------------------------------
# Wrappers around pallas_call
# --------------------------------------------------------------------------------------

def _pad_space_to_depth(x):
    """(B, H, W, C) -> pad 1 -> 2x2 space-to-depth -> (B, H/2+1, W/2+1, 4C)."""
    B, H, W, C = x.shape
    xp = jnp.pad(x, ((0, 0), (1, 1), (1, 1), (0, 0)))
    Hi, Wi = (H + 2) // 2, (W + 2) // 2
    xp = xp.reshape(B, Hi, 2, Wi, 2, C)                    # (B, i, dh, j, dw, c)
    xp = jnp.transpose(xp, (0, 1, 3, 2, 4, 5))             # (B, i, j, dh, dw, c)
    return xp.reshape(B, Hi, Wi, 4 * C)


def strided_conv4x4(x, wflat, b2, *, relu_out):
    """Conv2d(k=4, s=2, p=1) on NHWC input using the phase-decomposed Pallas kernel."""
    B, H, W, _ = x.shape
    Ho, Wo = H // 2, W // 2
    Cout = wflat.shape[1]
    xs = _pad_space_to_depth(x)
    _, Hi, Wi, C4 = xs.shape

    kernel = functools.partial(_strided_conv_kernel, Ho=Ho, Wo=Wo, relu_out=relu_out)
    return pl.pallas_call(
        kernel,
        out_shape=jax.ShapeDtypeStruct((B, Ho, Wo, Cout), x.dtype),
        grid=(B,),
        in_specs=[
            pl.BlockSpec((1, Hi, Wi, C4), lambda bi: (bi, 0, 0, 0)),
            pl.BlockSpec(wflat.shape, lambda bi: (0, 0)),
            pl.BlockSpec(b2.shape, lambda bi: (0, 0)),
        ],
        out_specs=pl.BlockSpec((1, Ho, Wo, Cout), lambda bi: (bi, 0, 0, 0)),
        compiler_params=pltpu.CompilerParams(dimension_semantics=("parallel",)),
    )(xs, wflat, b2)


def residual_layer(h, w1flat, w2, *, relu_out):
    """One fused ResidualLayer on NHWC input (optionally with the stack's final ReLU)."""
    B, H, W, C = h.shape
    hp = jnp.pad(h, ((0, 0), (1, 1), (1, 1), (0, 0)))

    kernel = functools.partial(_res_layer_kernel, H=H, W=W, relu_out=relu_out)
    return pl.pallas_call(
        kernel,
        out_shape=jax.ShapeDtypeStruct((B, H, W, C), h.dtype),
        grid=(B,),
        in_specs=[
            pl.BlockSpec((1, H + 2, W + 2, C), lambda bi: (bi, 0, 0, 0)),
            pl.BlockSpec(w1flat.shape, lambda bi: (0, 0)),
            pl.BlockSpec(w2.shape, lambda bi: (0, 0)),
        ],
        out_specs=pl.BlockSpec((1, H, W, C), lambda bi: (bi, 0, 0, 0)),
        compiler_params=pltpu.CompilerParams(dimension_semantics=("parallel",)),
    )(hp, w1flat, w2)


# --------------------------------------------------------------------------------------
# Parameter preparation (done ONCE, outside the jitted forward)
# --------------------------------------------------------------------------------------

def _flatten_strided_w(w_oihw):
    """PyTorch OIHW (Cout, Cin, 4, 4) -> phase-decomposed flat (16*Cin, Cout)."""
    w = jnp.transpose(w_oihw, (2, 3, 1, 0))                # HWIO (4, 4, Cin, Cout)
    _, _, cin, cout = w.shape
    w = w.reshape(2, 2, 2, 2, cin, cout)                   # (a, dh, b, dw, cin, cout)
    w = jnp.transpose(w, (0, 2, 1, 3, 4, 5))               # (a, b, dh, dw, cin, cout)
    return w.reshape(16 * cin, cout)


def _flatten_3x3_w(w_oihw):
    """PyTorch OIHW (Cout, Cin, 3, 3) -> flat (9*Cin, Cout) in (kh, kw, cin) order."""
    w = jnp.transpose(w_oihw, (2, 3, 1, 0))                # (3, 3, Cin, Cout)
    return w.reshape(9 * w.shape[2], w.shape[3])


def _flatten_1x1_w(w_oihw):
    """PyTorch OIHW (Cout, Cin, 1, 1) -> (Cin, Cout)."""
    return jnp.transpose(w_oihw[:, :, 0, 0], (1, 0))


def prepare_params(params):
    pp = {
        "c1_w": _flatten_strided_w(params["conv1_w"]),
        "c1_b": params["conv1_b"].reshape(1, -1).astype(jnp.float32),
        "c2_w": _flatten_strided_w(params["conv2_w"]),
        "c2_b": params["conv2_b"].reshape(1, -1).astype(jnp.float32),
        "c3_w": _flatten_strided_w(params["conv3_w"]),
        "c3_b": params["conv3_b"].reshape(1, -1).astype(jnp.float32),
        "res": [(_flatten_3x3_w(rw1), _flatten_1x1_w(rw2)) for rw1, rw2 in params["res"]],
    }
    return pp


# --------------------------------------------------------------------------------------
# EncoderFlex forward (NCHW in / NCHW out, like PyTorch)
# --------------------------------------------------------------------------------------

def encoder_flex_forward(pp, x_nchw):
    h = jnp.transpose(x_nchw, (0, 2, 3, 1))                # NCHW -> NHWC

    h = strided_conv4x4(h, pp["c1_w"], pp["c1_b"], relu_out=True)   # conv1 + ReLU
    h = strided_conv4x4(h, pp["c2_w"], pp["c2_b"], relu_out=True)   # conv2 + ReLU
    h = strided_conv4x4(h, pp["c3_w"], pp["c3_b"], relu_out=False)  # conv3

    n = len(pp["res"])
    for i, (w1, w2) in enumerate(pp["res"]):
        # the stack's trailing F.relu is fused into the last residual layer
        h = residual_layer(h, w1, w2, relu_out=(i == n - 1))
    if n == 0:
        h = jnp.maximum(h, 0.0)

    return jnp.transpose(h, (0, 3, 1, 2))                  # NHWC -> NCHW


# --------------------------------------------------------------------------------------
# Init + pure-JAX (XLA conv) reference, mirroring the PyTorch module exactly
# --------------------------------------------------------------------------------------

def init_params(key, in_channels, hidden_dim, num_residual_layers, residual_hidden_dim):
    ks = iter(jax.random.split(key, 8 + 2 * num_residual_layers))

    def w(shape, scale=0.1):
        return scale * jax.random.normal(next(ks), shape, jnp.float32)

    p = {}
    p["conv1_w"] = w((hidden_dim[0], in_channels, 4, 4))   # OIHW
    p["conv1_b"] = w((hidden_dim[0],))
    p["conv2_w"] = w((hidden_dim[1], hidden_dim[0], 4, 4))
    p["conv2_b"] = w((hidden_dim[1],))
    p["conv3_w"] = w((hidden_dim[2], hidden_dim[1], 4, 4))
    p["conv3_b"] = w((hidden_dim[2],))
    p["res"] = []
    for _ in range(num_residual_layers):
        rw1 = w((residual_hidden_dim, hidden_dim[2], 3, 3))  # Conv3x3, bias=False
        rw2 = w((hidden_dim[2], residual_hidden_dim, 1, 1))  # Conv1x1, bias=False
        p["res"].append((rw1, rw2))
    return p


def ref_forward(params, x):
    def conv(x, w, b=None, stride=1, pad=1):
        y = jax.lax.conv_general_dilated(
            x, w, (stride, stride), ((pad, pad), (pad, pad)),
            dimension_numbers=("NCHW", "OIHW", "NCHW"))
        return y if b is None else y + b[None, :, None, None]

    h = jax.nn.relu(conv(x, params["conv1_w"], params["conv1_b"], stride=2, pad=1))
    h = jax.nn.relu(conv(h, params["conv2_w"], params["conv2_b"], stride=2, pad=1))
    h = conv(h, params["conv3_w"], params["conv3_b"], stride=2, pad=1)
    for rw1, rw2 in params["res"]:
        t = conv(jax.nn.relu(h), rw1, None, stride=1, pad=1)
        t = conv(jax.nn.relu(t), rw2, None, stride=1, pad=0)
        h = h + t
    return jax.nn.relu(h)


if __name__ == "__main__":
    in_channels = 4
    hidden_dim = [8, 16, 32]
    num_residual_layers = 2
    residual_hidden_dim = 16
    B, H, W = 2, 16, 16

    key = jax.random.PRNGKey(0)
    params = init_params(key, in_channels, hidden_dim,
                         num_residual_layers, residual_hidden_dim)
    x = jax.random.normal(jax.random.fold_in(key, 999),
                          (B, in_channels, H, W), jnp.float32)

    pp = prepare_params(params)                 # one-time weight layout conversion

    fwd = jax.jit(encoder_flex_forward)
    out = jax.block_until_ready(fwd(pp, x))
    assert out.shape == (B, hidden_dim[2], H // 8, W // 8), out.shape

    ref = jax.block_until_ready(jax.jit(ref_forward)(params, x))
    max_err = float(jnp.max(jnp.abs(out - ref)))
    if not bool(jnp.allclose(out, ref, rtol=1e-3, atol=1e-3)):
        raise AssertionError(f"Pallas output mismatch vs reference, max abs err={max_err}")

    print("KERNEL_OK")
</pallas_src>

<mosaic_0001>
module attributes {stable_mosaic.version = 11 : i64} {
  func.func @_strided_conv_kernel(%arg0: i32, %arg1: memref<1x9x9x16xf32, #tpu.memory_space<vmem>>, %arg2: memref<64x8xf32, #tpu.memory_space<vmem>>, %arg3: memref<1x8xf32, #tpu.memory_space<vmem>>, %arg4: memref<1x8x8x8xf32, #tpu.memory_space<vmem>>) attributes {dimension_semantics = [#tpu.dimension_semantics<parallel>], iteration_bounds = array<i64: 2>, scalar_prefetch = 0 : i64, scratch_operands = 0 : i64, tpu.core_type = #tpu.core_type<tc>, window_params = [{transform_indices = @transform_0, window_bounds = array<i64: 1, 9, 9, 16>}, {pipeline_mode = #tpu.pipeline_mode<synchronous>, transform_indices = @transform_1, window_bounds = array<i64: 64, 8>}, {pipeline_mode = #tpu.pipeline_mode<synchronous>, transform_indices = @transform_2, window_bounds = array<i64: 1, 8>}, {transform_indices = @transform_3, window_bounds = array<i64: 1, 8, 8, 8>}]} {
    %c0 = arith.constant 0 : index
    %c0_0 = arith.constant 0 : index
    %c0_1 = arith.constant 0 : index
    %c0_2 = arith.constant 0 : index
    %0 = vector.load %arg1[%c0, %c0_0, %c0_1, %c0_2] : memref<1x9x9x16xf32, #tpu.memory_space<vmem>>, vector<1x9x9x16xf32>
    %1 = vector.shape_cast %0 : vector<1x9x9x16xf32> to vector<9x9x16xf32>
    %2 = vector.extract_strided_slice %1 {offsets = [0, 0, 0], sizes = [8, 8, 16], strides = [1, 1, 1]} : vector<9x9x16xf32> to vector<8x8x16xf32>
    %3 = vector.shape_cast %2 : vector<8x8x16xf32> to vector<64x16xf32>
    %4 = vector.extract_strided_slice %1 {offsets = [0, 1, 0], sizes = [8, 8, 16], strides = [1, 1, 1]} : vector<9x9x16xf32> to vector<8x8x16xf32>
    %5 = vector.shape_cast %4 : vector<8x8x16xf32> to vector<64x16xf32>
    %6 = vector.extract_strided_slice %1 {offsets = [1, 0, 0], sizes = [8, 8, 16], strides = [1, 1, 1]} : vector<9x9x16xf32> to vector<8x8x16xf32>
    %7 = vector.shape_cast %6 : vector<8x8x16xf32> to vector<64x16xf32>
    %8 = vector.extract_strided_slice %1 {offsets = [1, 1, 0], sizes = [8, 8, 16], strides = [1, 1, 1]} : vector<9x9x16xf32> to vector<8x8x16xf32>
    %9 = vector.shape_cast %8 : vector<8x8x16xf32> to vector<64x16xf32>
    %10 = tpu.concatenate %3, %5, %7, %9 in 1 : vector<64x16xf32>, vector<64x16xf32>, vector<64x16xf32>, vector<64x16xf32> -> vector<64x64xf32>
    %c0_3 = arith.constant 0 : index
    %c0_4 = arith.constant 0 : index
    %11 = vector.load %arg2[%c0_3, %c0_4] : memref<64x8xf32, #tpu.memory_space<vmem>>, vector<64x8xf32>
    %cst = arith.constant dense<0.000000e+00> : vector<64x8xf32>
    %12 = tpu.matmul %10, %11, %cst {dimension_numbers = #tpu.dot_dimension_numbers<[1], [0], [0], [1], [0, 0, 1, 1], [], []>} : vector<64x64xf32>, vector<64x8xf32>, vector<64x8xf32> -> vector<64x8xf32>
    %c0_5 = arith.constant 0 : index
    %c0_6 = arith.constant 0 : index
    %13 = vector.load %arg3[%c0_5, %c0_6] : memref<1x8xf32, #tpu.memory_space<vmem>>, vector<1x8xf32>
    %14 = vector.broadcast %13 : vector<1x8xf32> to vector<64x8xf32>
    %15 = arith.addf %12, %14 : vector<64x8xf32>
    %cst_7 = arith.constant 0.000000e+00 : f32
    %16 = vector.broadcast %cst_7 : f32 to vector<64x8xf32>
    %17 = arith.maximumf %15, %16 : vector<64x8xf32>
    %18 = vector.shape_cast %17 : vector<64x8xf32> to vector<1x8x8x8xf32>
    %c0_8 = arith.constant 0 : index
    %c0_9 = arith.constant 0 : index
    %c0_10 = arith.constant 0 : index
    %c0_11 = arith.constant 0 : index
    %19 = vector.load %arg4[%c0_8, %c0_9, %c0_10, %c0_11] : memref<1x8x8x8xf32, #tpu.memory_space<vmem>>, vector<1x8x8x8xf32>
    tpu.vector_store %arg4[%c0_8, %c0_9, %c0_10, %c0_11], %18 {strides = array<i32>} : memref<1x8x8x8xf32, #tpu.memory_space<vmem>>, vector<1x8x8x8xf32>,
    return
  }
  func.func @transform_0(%arg0: i32) -> (i32, i32, i32, i32) {
    %c0_i32 = arith.constant 0 : i32
    %c0_i32_0 = arith.constant 0 : i32
    %c0_i32_1 = arith.constant 0 : i32
    %c0_i32_2 = arith.constant 0 : i32
    return %arg0, %c0_i32, %c0_i32_0, %c0_i32_1 : i32, i32, i32, i32
  }
  func.func @transform_1(%arg0: i32) -> (i32, i32) {
    %c0_i32 = arith.constant 0 : i32
    %c0_i32_0 = arith.constant 0 : i32
    %c0_i32_1 = arith.constant 0 : i32
    return %c0_i32, %c0_i32_0 : i32, i32
  }
  func.func @transform_2(%arg0: i32) -> (i32, i32) {
    %c0_i32 = arith.constant 0 : i32
    %c0_i32_0 = arith.constant 0 : i32
    %c0_i32_1 = arith.constant 0 : i32
    return %c0_i32, %c0_i32_0 : i32, i32
  }
  func.func @transform_3(%arg0: i32) -> (i32, i32, i32, i32) {
    %c0_i32 = arith.constant 0 : i32
    %c0_i32_0 = arith.constant 0 : i32
    %c0_i32_1 = arith.constant 0 : i32
    %c0_i32_2 = arith.constant 0 : i32
    return %arg0, %c0_i32, %c0_i32_0, %c0_i32_1 : i32, i32, i32, i32
  }
}

module attributes {stable_mosaic.version = 11 : i64} {
  func.func @_strided_conv_kernel(%arg0: i32, %arg1: memref<1x5x5x32xf32, #tpu.memory_space<vmem>>, %arg2: memref<128x16xf32, #tpu.memory_space<vmem>>, %arg3: memref<1x16xf32, #tpu.memory_space<vmem>>, %arg4: memref<1x4x4x16xf32, #tpu.memory_space<vmem>>) attributes {dimension_semantics = [#tpu.dimension_semantics<parallel>], iteration_bounds = array<i64: 2>, scalar_prefetch = 0 : i64, scratch_operands = 0 : i64, tpu.core_type = #tpu.core_type<tc>, window_params = [{transform_indices = @transform_0, window_bounds = array<i64: 1, 5, 5, 32>}, {pipeline_mode = #tpu.pipeline_mode<synchronous>, transform_indices = @transform_1, window_bounds = array<i64: 128, 16>}, {pipeline_mode = #tpu.pipeline_mode<synchronous>, transform_indices = @transform_2, window_bounds = array<i64: 1, 16>}, {transform_indices = @transform_3, window_bounds = array<i64: 1, 4, 4, 16>}]} {
    %c0 = arith.constant 0 : index
    %c0_0 = arith.constant 0 : index
    %c0_1 = arith.constant 0 : index
    %c0_2 = arith.constant 0 : index
    %0 = vector.load %arg1[%c0, %c0_0, %c0_1, %c0_2] : memref<1x5x5x32xf32, #tpu.memory_space<vmem>>, vector<1x5x5x32xf32>
    %1 = vector.shape_cast %0 : vector<1x5x5x32xf32> to vector<5x5x32xf32>
    %2 = vector.extract_strided_slice %1 {offsets = [0, 0, 0], sizes = [4, 4, 32], strides = [1, 1, 1]} : vector<5x5x32xf32> to vector<4x4x32xf32>
    %3 = vector.shape_cast %2 : vector<4x4x32xf32> to vector<16x32xf32>
    %4 = vector.extract_strided_slice %1 {offsets = [0, 1, 0], sizes = [4, 4, 32], strides = [1, 1, 1]} : vector<5x5x32xf32> to vector<4x4x32xf32>
    %5 = vector.shape_cast %4 : vector<4x4x32xf32> to vector<16x32xf32>
    %6 = vector.extract_strided_slice %1 {offsets = [1, 0, 0], sizes = [4, 4, 32], strides = [1, 1, 1]} : vector<5x5x32xf32> to vector<4x4x32xf32>
    %7 = vector.shape_cast %6 : vector<4x4x32xf32> to vector<16x32xf32>
    %8 = vector.extract_strided_slice %1 {offsets = [1, 1, 0], sizes = [4, 4, 32], strides = [1, 1, 1]} : vector<5x5x32xf32> to vector<4x4x32xf32>
    %9 = vector.shape_cast %8 : vector<4x4x32xf32> to vector<16x32xf32>
    %10 = tpu.concatenate %3, %5, %7, %9 in 1 : vector<16x32xf32>, vector<16x32xf32>, vector<16x32xf32>, vector<16x32xf32> -> vector<16x128xf32>
    %c0_3 = arith.constant 0 : index
    %c0_4 = arith.constant 0 : index
    %11 = vector.load %arg2[%c0_3, %c0_4] : memref<128x16xf32, #tpu.memory_space<vmem>>, vector<128x16xf32>
    %cst = arith.constant dense<0.000000e+00> : vector<16x16xf32>
    %12 = tpu.matmul %10, %11, %cst {dimension_numbers = #tpu.dot_dimension_numbers<[1], [0], [0], [1], [0, 0, 1, 1], [], []>} : vector<16x128xf32>, vector<128x16xf32>, vector<16x16xf32> -> vector<16x16xf32>
    %c0_5 = arith.constant 0 : index
    %c0_6 = arith.constant 0 : index
    %13 = vector.load %arg3[%c0_5, %c0_6] : memref<1x16xf32, #tpu.memory_space<vmem>>, vector<1x16xf32>
    %14 = vector.broadcast %13 : vector<1x16xf32> to vector<16x16xf32>
    %15 = arith.addf %12, %14 : vector<16x16xf32>
    %cst_7 = arith.constant 0.000000e+00 : f32
    %16 = vector.broadcast %cst_7 : f32 to vector<16x16xf32>
    %17 = arith.maximumf %15, %16 : vector<16x16xf32>
    %18 = vector.shape_cast %17 : vector<16x16xf32> to vector<1x4x4x16xf32>
    %c0_8 = arith.constant 0 : index
    %c0_9 = arith.constant 0 : index
    %c0_10 = arith.constant 0 : index
    %c0_11 = arith.constant 0 : index
    %19 = vector.load %arg4[%c0_8, %c0_9, %c0_10, %c0_11] : memref<1x4x4x16xf32, #tpu.memory_space<vmem>>, vector<1x4x4x16xf32>
    tpu.vector_store %arg4[%c0_8, %c0_9, %c0_10, %c0_11], %18 {strides = array<i32>} : memref<1x4x4x16xf32, #tpu.memory_space<vmem>>, vector<1x4x4x16xf32>,
    return
  }
  func.func @transform_0(%arg0: i32) -> (i32, i32, i32, i32) {
    %c0_i32 = arith.constant 0 : i32
    %c0_i32_0 = arith.constant 0 : i32
    %c0_i32_1 = arith.constant 0 : i32
    %c0_i32_2 = arith.constant 0 : i32
    return %arg0, %c0_i32, %c0_i32_0, %c0_i32_1 : i32, i32, i32, i32
  }
  func.func @transform_1(%arg0: i32) -> (i32, i32) {
    %c0_i32 = arith.constant 0 : i32
    %c0_i32_0 = arith.constant 0 : i32
    %c0_i32_1 = arith.constant 0 : i32
    return %c0_i32, %c0_i32_0 : i32, i32
  }
  func.func @transform_2(%arg0: i32) -> (i32, i32) {
    %c0_i32 = arith.constant 0 : i32
    %c0_i32_0 = arith.constant 0 : i32
    %c0_i32_1 = arith.constant 0 : i32
    return %c0_i32, %c0_i32_0 : i32, i32
  }
  func.func @transform_3(%arg0: i32) -> (i32, i32, i32, i32) {
    %c0_i32 = arith.constant 0 : i32
    %c0_i32_0 = arith.constant 0 : i32
    %c0_i32_1 = arith.constant 0 : i32
    %c0_i32_2 = arith.constant 0 : i32
    return %arg0, %c0_i32, %c0_i32_0, %c0_i32_1 : i32, i32, i32, i32
  }
}

module attributes {stable_mosaic.version = 11 : i64} {
  func.func @_strided_conv_kernel(%arg0: i32, %arg1: memref<1x3x3x64xf32, #tpu.memory_space<vmem>>, %arg2: memref<256x32xf32, #tpu.memory_space<vmem>>, %arg3: memref<1x32xf32, #tpu.memory_space<vmem>>, %arg4: memref<1x2x2x32xf32, #tpu.memory_space<vmem>>) attributes {dimension_semantics = [#tpu.dimension_semantics<parallel>], iteration_bounds = array<i64: 2>, scalar_prefetch = 0 : i64, scratch_operands = 0 : i64, tpu.core_type = #tpu.core_type<tc>, window_params = [{transform_indices = @transform_0, window_bounds = array<i64: 1, 3, 3, 64>}, {pipeline_mode = #tpu.pipeline_mode<synchronous>, transform_indices = @transform_1, window_bounds = array<i64: 256, 32>}, {pipeline_mode = #tpu.pipeline_mode<synchronous>, transform_indices = @transform_2, window_bounds = array<i64: 1, 32>}, {transform_indices = @transform_3, window_bounds = array<i64: 1, 2, 2, 32>}]} {
    %c0 = arith.constant 0 : index
    %c0_0 = arith.constant 0 : index
    %c0_1 = arith.constant 0 : index
    %c0_2 = arith.constant 0 : index
    %0 = vector.load %arg1[%c0, %c0_0, %c0_1, %c0_2] : memref<1x3x3x64xf32, #tpu.memory_space<vmem>>, vector<1x3x3x64xf32>
    %1 = vector.shape_cast %0 : vector<1x3x3x64xf32> to vector<3x3x64xf32>
    %2 = vector.extract_strided_slice %1 {offsets = [0, 0, 0], sizes = [2, 2, 64], strides = [1, 1, 1]} : vector<3x3x64xf32> to vector<2x2x64xf32>
    %3 = vector.shape_cast %2 : vector<2x2x64xf32> to vector<4x64xf32>
    %4 = vector.extract_strided_slice %1 {offsets = [0, 1, 0], sizes = [2, 2, 64], strides = [1, 1, 1]} : vector<3x3x64xf32> to vector<2x2x64xf32>
    %5 = vector.shape_cast %4 : vector<2x2x64xf32> to vector<4x64xf32>
    %6 = vector.extract_strided_slice %1 {offsets = [1, 0, 0], sizes = [2, 2, 64], strides = [1, 1, 1]} : vector<3x3x64xf32> to vector<2x2x64xf32>
    %7 = vector.shape_cast %6 : vector<2x2x64xf32> to vector<4x64xf32>
    %8 = vector.extract_strided_slice %1 {offsets = [1, 1, 0], sizes = [2, 2, 64], strides = [1, 1, 1]} : vector<3x3x64xf32> to vector<2x2x64xf32>
    %9 = vector.shape_cast %8 : vector<2x2x64xf32> to vector<4x64xf32>
    %10 = tpu.concatenate %3, %5, %7, %9 in 1 : vector<4x64xf32>, vector<4x64xf32>, vector<4x64xf32>, vector<4x64xf32> -> vector<4x256xf32>
    %c0_3 = arith.constant 0 : index
    %c0_4 = arith.constant 0 : index
    %11 = vector.load %arg2[%c0_3, %c0_4] : memref<256x32xf32, #tpu.memory_space<vmem>>, vector<256x32xf32>
    %cst = arith.constant dense<0.000000e+00> : vector<4x32xf32>
    %12 = tpu.matmul %10, %11, %cst {dimension_numbers = #tpu.dot_dimension_numbers<[1], [0], [0], [1], [0, 0, 1, 1], [], []>} : vector<4x256xf32>, vector<256x32xf32>, vector<4x32xf32> -> vector<4x32xf32>
    %c0_5 = arith.constant 0 : index
    %c0_6 = arith.constant 0 : index
    %13 = vector.load %arg3[%c0_5, %c0_6] : memref<1x32xf32, #tpu.memory_space<vmem>>, vector<1x32xf32>
    %14 = vector.broadcast %13 : vector<1x32xf32> to vector<4x32xf32>
    %15 = arith.addf %12, %14 : vector<4x32xf32>
    %16 = vector.shape_cast %15 : vector<4x32xf32> to vector<1x2x2x32xf32>
    %c0_7 = arith.constant 0 : index
    %c0_8 = arith.constant 0 : index
    %c0_9 = arith.constant 0 : index
    %c0_10 = arith.constant 0 : index
    %17 = vector.load %arg4[%c0_7, %c0_8, %c0_9, %c0_10] : memref<1x2x2x32xf32, #tpu.memory_space<vmem>>, vector<1x2x2x32xf32>
    tpu.vector_store %arg4[%c0_7, %c0_8, %c0_9, %c0_10], %16 {strides = array<i32>} : memref<1x2x2x32xf32, #tpu.memory_space<vmem>>, vector<1x2x2x32xf32>,
    return
  }
  func.func @transform_0(%arg0: i32) -> (i32, i32, i32, i32) {
    %c0_i32 = arith.constant 0 : i32
    %c0_i32_0 = arith.constant 0 : i32
    %c0_i32_1 = arith.constant 0 : i32
    %c0_i32_2 = arith.constant 0 : i32
    return %arg0, %c0_i32, %c0_i32_0, %c0_i32_1 : i32, i32, i32, i32
  }
  func.func @transform_1(%arg0: i32) -> (i32, i32) {
    %c0_i32 = arith.constant 0 : i32
    %c0_i32_0 = arith.constant 0 : i32
    %c0_i32_1 = arith.constant 0 : i32
    return %c0_i32, %c0_i32_0 : i32, i32
  }
  func.func @transform_2(%arg0: i32) -> (i32, i32) {
    %c0_i32 = arith.constant 0 : i32
    %c0_i32_0 = arith.constant 0 : i32
    %c0_i32_1 = arith.constant 0 : i32
    return %c0_i32, %c0_i32_0 : i32, i32
  }
  func.func @transform_3(%arg0: i32) -> (i32, i32, i32, i32) {
    %c0_i32 = arith.constant 0 : i32
    %c0_i32_0 = arith.constant 0 : i32
    %c0_i32_1 = arith.constant 0 : i32
    %c0_i32_2 = arith.constant 0 : i32
    return %arg0, %c0_i32, %c0_i32_0, %c0_i32_1 : i32, i32, i32, i32
  }
}

module attributes {stable_mosaic.version = 11 : i64} {
  func.func @_res_layer_kernel(%arg0: i32, %arg1: memref<1x4x4x32xf32, #tpu.memory_space<vmem>>, %arg2: memref<288x16xf32, #tpu.memory_space<vmem>>, %arg3: memref<16x32xf32, #tpu.memory_space<vmem>>, %arg4: memref<1x2x2x32xf32, #tpu.memory_space<vmem>>) attributes {dimension_semantics = [#tpu.dimension_semantics<parallel>], iteration_bounds = array<i64: 2>, scalar_prefetch = 0 : i64, scratch_operands = 0 : i64, tpu.core_type = #tpu.core_type<tc>, window_params = [{transform_indices = @transform_0, window_bounds = array<i64: 1, 4, 4, 32>}, {pipeline_mode = #tpu.pipeline_mode<synchronous>, transform_indices = @transform_1, window_bounds = array<i64: 288, 16>}, {pipeline_mode = #tpu.pipeline_mode<synchronous>, transform_indices = @transform_2, window_bounds = array<i64: 16, 32>}, {transform_indices = @transform_3, window_bounds = array<i64: 1, 2, 2, 32>}]} {
    %c0 = arith.constant 0 : index
    %c0_0 = arith.constant 0 : index
    %c0_1 = arith.constant 0 : index
    %c0_2 = arith.constant 0 : index
    %0 = vector.load %arg1[%c0, %c0_0, %c0_1, %c0_2] : memref<1x4x4x32xf32, #tpu.memory_space<vmem>>, vector<1x4x4x32xf32>
    %1 = vector.shape_cast %0 : vector<1x4x4x32xf32> to vector<4x4x32xf32>
    %cst = arith.constant 0.000000e+00 : f32
    %2 = vector.broadcast %cst : f32 to vector<4x4x32xf32>
    %3 = arith.maximumf %1, %2 : vector<4x4x32xf32>
    %4 = vector.extract_strided_slice %3 {offsets = [0, 0, 0], sizes = [2, 2, 32], strides = [1, 1, 1]} : vector<4x4x32xf32> to vector<2x2x32xf32>
    %5 = vector.shape_cast %4 : vector<2x2x32xf32> to vector<4x32xf32>
    %6 = vector.extract_strided_slice %3 {offsets = [0, 1, 0], sizes = [2, 2, 32], strides = [1, 1, 1]} : vector<4x4x32xf32> to vector<2x2x32xf32>
    %7 = vector.shape_cast %6 : vector<2x2x32xf32> to vector<4x32xf32>
    %8 = vector.extract_strided_slice %3 {offsets = [0, 2, 0], sizes = [2, 2, 32], strides = [1, 1, 1]} : vector<4x4x32xf32> to vector<2x2x32xf32>
    %9 = vector.shape_cast %8 : vector<2x2x32xf32> to vector<4x32xf32>
    %10 = vector.extract_strided_slice %3 {offsets = [1, 0, 0], sizes = [2, 2, 32], strides = [1, 1, 1]} : vector<4x4x32xf32> to vector<2x2x32xf32>
    %11 = vector.shape_cast %10 : vector<2x2x32xf32> to vector<4x32xf32>
    %12 = vector.extract_strided_slice %3 {offsets = [1, 1, 0], sizes = [2, 2, 32], strides = [1, 1, 1]} : vector<4x4x32xf32> to vector<2x2x32xf32>
    %13 = vector.shape_cast %12 : vector<2x2x32xf32> to vector<4x32xf32>
    %14 = vector.extract_strided_slice %3 {offsets = [1, 2, 0], sizes = [2, 2, 32], strides = [1, 1, 1]} : vector<4x4x32xf32> to vector<2x2x32xf32>
    %15 = vector.shape_cast %14 : vector<2x2x32xf32> to vector<4x32xf32>
    %16 = vector.extract_strided_slice %3 {offsets = [2, 0, 0], sizes = [2, 2, 32], strides = [1, 1, 1]} : vector<4x4x32xf32> to vector<2x2x32xf32>
    %17 = vector.shape_cast %16 : vector<2x2x32xf32> to vector<4x32xf32>
    %18 = vector.extract_strided_slice %3 {offsets = [2, 1, 0], sizes = [2, 2, 32], strides = [1, 1, 1]} : vector<4x4x32xf32> to vector<2x2x32xf32>
    %19 = vector.shape_cast %18 : vector<2x2x32xf32> to vector<4x32xf32>
    %20 = vector.extract_strided_slice %3 {offsets = [2, 2, 0], sizes = [2, 2, 32], strides = [1, 1, 1]} : vector<4x4x32xf32> to vector<2x2x32xf32>
    %21 = vector.shape_cast %20 : vector<2x2x32xf32> to vector<4x32xf32>
    %22 = tpu.concatenate %5, %7, %9, %11, %13, %15, %17, %19, %21 in 1 : vector<4x32xf32>, vector<4x32xf32>, vector<4x32xf32>, vector<4x32xf32>, vector<4x32xf32>, vector<4x32xf32>, vector<4x32xf32>, vector<4x32xf32>, vector<4x32xf32> -> vector<4x288xf32>
    %c0_3 = arith.constant 0 : index
    %c0_4 = arith.constant 0 : index
    %23 = vector.load %arg2[%c0_3, %c0_4] : memref<288x16xf32, #tpu.memory_space<vmem>>, vector<288x16xf32>
    %cst_5 = arith.constant dense<0.000000e+00> : vector<4x16xf32>
    %24 = tpu.matmul %22, %23, %cst_5 {dimension_numbers = #tpu.dot_dimension_numbers<[1], [0], [0], [1], [0, 0, 1, 1], [], []>} : vector<4x288xf32>, vector<288x16xf32>, vector<4x16xf32> -> vector<4x16xf32>
    %cst_6 = arith.constant 0.000000e+00 : f32
    %25 = vector.broadcast %cst_6 : f32 to vector<4x16xf32>
    %26 = arith.maximumf %24, %25 : vector<4x16xf32>
    %c0_7 = arith.constant 0 : index
    %c0_8 = arith.constant 0 : index
    %27 = vector.load %arg3[%c0_7, %c0_8] : memref<16x32xf32, #tpu.memory_space<vmem>>, vector<16x32xf32>
    %cst_9 = arith.constant dense<0.000000e+00> : vector<4x32xf32>
    %28 = tpu.matmul %26, %27, %cst_9 {dimension_numbers = #tpu.dot_dimension_numbers<[1], [0], [0], [1], [0, 0, 1, 1], [], []>} : vector<4x16xf32>, vector<16x32xf32>, vector<4x32xf32> -> vector<4x32xf32>
    %29 = vector.extract_strided_slice %1 {offsets = [1, 1, 0], sizes = [2, 2, 32], strides = [1, 1, 1]} : vector<4x4x32xf32> to vector<2x2x32xf32>
    %30 = vector.shape_cast %29 : vector<2x2x32xf32> to vector<4x32xf32>
    %31 = arith.addf %28, %30 : vector<4x32xf32>
    %cst_10 = arith.constant 0.000000e+00 : f32
    %32 = vector.broadcast %cst_10 : f32 to vector<4x32xf32>
    %33 = arith.maximumf %31, %32 : vector<4x32xf32>
    %34 = vector.shape_cast %33 : vector<4x32xf32> to vector<1x2x2x32xf32>
    %c0_11 = arith.constant 0 : index
    %c0_12 = arith.constant 0 : index
    %c0_13 = arith.constant 0 : index
    %c0_14 = arith.constant 0 : index
    %35 = vector.load %arg4[%c0_11, %c0_12, %c0_13, %c0_14] : memref<1x2x2x32xf32, #tpu.memory_space<vmem>>, vector<1x2x2x32xf32>
    tpu.vector_store %arg4[%c0_11, %c0_12, %c0_13, %c0_14], %34 {strides = array<i32>} : memref<1x2x2x32xf32, #tpu.memory_space<vmem>>, vector<1x2x2x32xf32>,
    return
  }
  func.func @transform_0(%arg0: i32) -> (i32, i32, i32, i32) {
    %c0_i32 = arith.constant 0 : i32
    %c0_i32_0 = arith.constant 0 : i32
    %c0_i32_1 = arith.constant 0 : i32
    %c0_i32_2 = arith.constant 0 : i32
    return %arg0, %c0_i32, %c0_i32_0, %c0_i32_1 : i32, i32, i32, i32
  }
  func.func @transform_1(%arg0: i32) -> (i32, i32) {
    %c0_i32 = arith.constant 0 : i32
    %c0_i32_0 = arith.constant 0 : i32
    %c0_i32_1 = arith.constant 0 : i32
    return %c0_i32, %c0_i32_0 : i32, i32
  }
  func.func @transform_2(%arg0: i32) -> (i32, i32) {
    %c0_i32 = arith.constant 0 : i32
    %c0_i32_0 = arith.constant 0 : i32
    %c0_i32_1 = arith.constant 0 : i32
    return %c0_i32, %c0_i32_0 : i32, i32
  }
  func.func @transform_3(%arg0: i32) -> (i32, i32, i32, i32) {
    %c0_i32 = arith.constant 0 : i32
    %c0_i32_0 = arith.constant 0 : i32
    %c0_i32_1 = arith.constant 0 : i32
    %c0_i32_2 = arith.constant 0 : i32
    return %arg0, %c0_i32, %c0_i32_0, %c0_i32_1 : i32, i32, i32, i32
  }
}

module attributes {stable_mosaic.version = 11 : i64} {
  func.func @_res_layer_kernel(%arg0: i32, %arg1: memref<1x4x4x32xf32, #tpu.memory_space<vmem>>, %arg2: memref<288x16xf32, #tpu.memory_space<vmem>>, %arg3: memref<16x32xf32, #tpu.memory_space<vmem>>, %arg4: memref<1x2x2x32xf32, #tpu.memory_space<vmem>>) attributes {dimension_semantics = [#tpu.dimension_semantics<parallel>], iteration_bounds = array<i64: 2>, scalar_prefetch = 0 : i64, scratch_operands = 0 : i64, tpu.core_type = #tpu.core_type<tc>, window_params = [{transform_indices = @transform_0, window_bounds = array<i64: 1, 4, 4, 32>}, {pipeline_mode = #tpu.pipeline_mode<synchronous>, transform_indices = @transform_1, window_bounds = array<i64: 288, 16>}, {pipeline_mode = #tpu.pipeline_mode<synchronous>, transform_indices = @transform_2, window_bounds = array<i64: 16, 32>}, {transform_indices = @transform_3, window_bounds = array<i64: 1, 2, 2, 32>}]} {
    %c0 = arith.constant 0 : index
    %c0_0 = arith.constant 0 : index
    %c0_1 = arith.constant 0 : index
    %c0_2 = arith.constant 0 : index
    %0 = vector.load %arg1[%c0, %c0_0, %c0_1, %c0_2] : memref<1x4x4x32xf32, #tpu.memory_space<vmem>>, vector<1x4x4x32xf32>
    %1 = vector.shape_cast %0 : vector<1x4x4x32xf32> to vector<4x4x32xf32>
    %cst = arith.constant 0.000000e+00 : f32
    %2 = vector.broadcast %cst : f32 to vector<4x4x32xf32>
    %3 = arith.maximumf %1, %2 : vector<4x4x32xf32>
    %4 = vector.extract_strided_slice %3 {offsets = [0, 0, 0], sizes = [2, 2, 32], strides = [1, 1, 1]} : vector<4x4x32xf32> to vector<2x2x32xf32>
    %5 = vector.shape_cast %4 : vector<2x2x32xf32> to vector<4x32xf32>
    %6 = vector.extract_strided_slice %3 {offsets = [0, 1, 0], sizes = [2, 2, 32], strides = [1, 1, 1]} : vector<4x4x32xf32> to vector<2x2x32xf32>
    %7 = vector.shape_cast %6 : vector<2x2x32xf32> to vector<4x32xf32>
    %8 = vector.extract_strided_slice %3 {offsets = [0, 2, 0], sizes = [2, 2, 32], strides = [1, 1, 1]} : vector<4x4x32xf32> to vector<2x2x32xf32>
    %9 = vector.shape_cast %8 : vector<2x2x32xf32> to vector<4x32xf32>
    %10 = vector.extract_strided_slice %3 {offsets = [1, 0, 0], sizes = [2, 2, 32], strides = [1, 1, 1]} : vector<4x4x32xf32> to vector<2x2x32xf32>
    %11 = vector.shape_cast %10 : vector<2x2x32xf32> to vector<4x32xf32>
    %12 = vector.extract_strided_slice %3 {offsets = [1, 1, 0], sizes = [2, 2, 32], strides = [1, 1, 1]} : vector<4x4x32xf32> to vector<2x2x32xf32>
    %13 = vector.shape_cast %12 : vector<2x2x32xf32> to vector<4x32xf32>
    %14 = vector.extract_strided_slice %3 {offsets = [1, 2, 0], sizes = [2, 2, 32], strides = [1, 1, 1]} : vector<4x4x32xf32> to vector<2x2x32xf32>
    %15 = vector.shape_cast %14 : vector<2x2x32xf32> to vector<4x32xf32>
    %16 = vector.extract_strided_slice %3 {offsets = [2, 0, 0], sizes = [2, 2, 32], strides = [1, 1, 1]} : vector<4x4x32xf32> to vector<2x2x32xf32>
    %17 = vector.shape_cast %16 : vector<2x2x32xf32> to vector<4x32xf32>
    %18 = vector.extract_strided_slice %3 {offsets = [2, 1, 0], sizes = [2, 2, 32], strides = [1, 1, 1]} : vector<4x4x32xf32> to vector<2x2x32xf32>
    %19 = vector.shape_cast %18 : vector<2x2x32xf32> to vector<4x32xf32>
    %20 = vector.extract_strided_slice %3 {offsets = [2, 2, 0], sizes = [2, 2, 32], strides = [1, 1, 1]} : vector<4x4x32xf32> to vector<2x2x32xf32>
    %21 = vector.shape_cast %20 : vector<2x2x32xf32> to vector<4x32xf32>
    %22 = tpu.concatenate %5, %7, %9, %11, %13, %15, %17, %19, %21 in 1 : vector<4x32xf32>, vector<4x32xf32>, vector<4x32xf32>, vector<4x32xf32>, vector<4x32xf32>, vector<4x32xf32>, vector<4x32xf32>, vector<4x32xf32>, vector<4x32xf32> -> vector<4x288xf32>
    %c0_3 = arith.constant 0 : index
    %c0_4 = arith.constant 0 : index
    %23 = vector.load %arg2[%c0_3, %c0_4] : memref<288x16xf32, #tpu.memory_space<vmem>>, vector<288x16xf32>
    %cst_5 = arith.constant dense<0.000000e+00> : vector<4x16xf32>
    %24 = tpu.matmul %22, %23, %cst_5 {dimension_numbers = #tpu.dot_dimension_numbers<[1], [0], [0], [1], [0, 0, 1, 1], [], []>} : vector<4x288xf32>, vector<288x16xf32>, vector<4x16xf32> -> vector<4x16xf32>
    %cst_6 = arith.constant 0.000000e+00 : f32
    %25 = vector.broadcast %cst_6 : f32 to vector<4x16xf32>
    %26 = arith.maximumf %24, %25 : vector<4x16xf32>
    %c0_7 = arith.constant 0 : index
    %c0_8 = arith.constant 0 : index
    %27 = vector.load %arg3[%c0_7, %c0_8] : memref<16x32xf32, #tpu.memory_space<vmem>>, vector<16x32xf32>
    %cst_9 = arith.constant dense<0.000000e+00> : vector<4x32xf32>
    %28 = tpu.matmul %26, %27, %cst_9 {dimension_numbers = #tpu.dot_dimension_numbers<[1], [0], [0], [1], [0, 0, 1, 1], [], []>} : vector<4x16xf32>, vector<16x32xf32>, vector<4x32xf32> -> vector<4x32xf32>
    %29 = vector.extract_strided_slice %1 {offsets = [1, 1, 0], sizes = [2, 2, 32], strides = [1, 1, 1]} : vector<4x4x32xf32> to vector<2x2x32xf32>
    %30 = vector.shape_cast %29 : vector<2x2x32xf32> to vector<4x32xf32>
    %31 = arith.addf %28, %30 : vector<4x32xf32>
    %32 = vector.shape_cast %31 : vector<4x32xf32> to vector<1x2x2x32xf32>
    %c0_10 = arith.constant 0 : index
    %c0_11 = arith.constant 0 : index
    %c0_12 = arith.constant 0 : index
    %c0_13 = arith.constant 0 : index
    %33 = vector.load %arg4[%c0_10, %c0_11, %c0_12, %c0_13] : memref<1x2x2x32xf32, #tpu.memory_space<vmem>>, vector<1x2x2x32xf32>
    tpu.vector_store %arg4[%c0_10, %c0_11, %c0_12, %c0_13], %32 {strides = array<i32>} : memref<1x2x2x32xf32, #tpu.memory_space<vmem>>, vector<1x2x2x32xf32>,
    return
  }
  func.func @transform_0(%arg0: i32) -> (i32, i32, i32, i32) {
    %c0_i32 = arith.constant 0 : i32
    %c0_i32_0 = arith.constant 0 : i32
    %c0_i32_1 = arith.constant 0 : i32
    %c0_i32_2 = arith.constant 0 : i32
    return %arg0, %c0_i32, %c0_i32_0, %c0_i32_1 : i32, i32, i32, i32
  }
  func.func @transform_1(%arg0: i32) -> (i32, i32) {
    %c0_i32 = arith.constant 0 : i32
    %c0_i32_0 = arith.constant 0 : i32
    %c0_i32_1 = arith.constant 0 : i32
    return %c0_i32, %c0_i32_0 : i32, i32
  }
  func.func @transform_2(%arg0: i32) -> (i32, i32) {
    %c0_i32 = arith.constant 0 : i32
    %c0_i32_0 = arith.constant 0 : i32
    %c0_i32_1 = arith.constant 0 : i32
    return %c0_i32, %c0_i32_0 : i32, i32
  }
  func.func @transform_3(%arg0: i32) -> (i32, i32, i32, i32) {
    %c0_i32 = arith.constant 0 : i32
    %c0_i32_0 = arith.constant 0 : i32
    %c0_i32_1 = arith.constant 0 : i32
    %c0_i32_2 = arith.constant 0 : i32
    return %arg0, %c0_i32, %c0_i32_0, %c0_i32_1 : i32, i32, i32, i32
  }
}

</mosaic_0001>

<bundles_post_ra>
// kernel: encoder_flex_forward.6
= control target key start
LH: loop header
LB: loop body
LE: loop exit
PB: predicated region body
PF: predicated region fallthrough
CT: control target
= control target key end

     0   :  { %s581_s12 = smov 0   ;;  %s694_s0 = inlined_call_operand.vmem [shape: f32[2,5,5,32], index: 0, kind: input, shape index: {}]   ;;  %s695_s1 = inlined_call_operand.vmem [shape: f32[128,16], index: 1, kind: input, shape index: {}]   ;;  %s696_s2 = inlined_call_operand.vmem [shape: f32[1,16], index: 2, kind: input, shape index: {}]   ;;  %s697_s3 = inlined_call_operand.vmem [shape: f32[2,4,4,16], index: 3, kind: output, shape index: {}]  }
   0x1 LB: > { %s412_s13 = sadd.s32 4294967295, %s556_s12   ;;  %p416_p0 = scmp.ge.s32.totalorder %s556_s12, 1  ;;  %s556_s12 = sphi %s581_s12, %s13_s12  }
   0x2   : > { %p137_p1 = scmp.lt.s32.totalorder %s556_s12, 3 }
   0x4   : > { %p138_p2 = pnand %p416_p0, %p137_p1 }
   0x5   : > { %p161_p3 = scmp.lt.s32.totalorder (!%p138_p2), %s412_s13, 1  ;;  %v246_v0 = vld [vmem:[%s695_s1] sm:$0xff] (!%p138_p2)  ;;  %v247_v1 = vld [vmem:[%s695_s1 + $0x8] sm:$0xff] (!%p138_p2)  ;;  %v248_v3 = vld [vmem:[%s695_s1 + $0x10] sm:$0xff] (!%p138_p2)  ;;  %vm184_vm0 = vcmask (!%p138_p2), 1042432   ;;  %vm185_vm1 = vcmask (!%p138_p2), 1046532  }
   0x6   : > { %141 = sbr.rel (%p138_p2) target bundleno = 372 (0x174), region = 32  ;;  %v482_v2 = vpack.c.bf16 (!%p138_p2), %v247_v1, %v246_v0  ;;  %v249_v4 = vld [vmem:[%s695_s1 + $0x18] sm:$0xff] (!%p138_p2)  ;;  %v250_v6 = vld [vmem:[%s695_s1 + $0x20] sm:$0xff] (!%p138_p2)  ;;  %v251_v7 = vld [vmem:[%s695_s1 + $0x28] sm:$0xff] (!%p138_p2)  ;;  %s558_s17 = smov (!%p138_p2), 32   ;;  %vm237_vm3 = vcmask (!%p138_p2), 261120  }
   0x7   : > { %v486_v5 = vpack.c.bf16 (!%p138_p2), %v249_v4, %v248_v3  ;;  %v252_v8 = vld [vmem:[%s695_s1 + $0x30] sm:$0xff] (!%p138_p2)  ;;  %v253_v9 = vld [vmem:[%s695_s1 + $0x38] sm:$0xff] (!%p138_p2)  ;;  %v490_v10 = vpack.c.bf16 (!%p138_p2), %v251_v7, %v250_v6  ;;  %vm636_vm2 = vmor (!%p138_p2), %vm184_vm0, %vm185_vm1  ;;  %s559_s22 = smov (!%p138_p2), 96   ;;  %s560_s23 = smov (!%p138_p2), 64   ;;  %vm240_vm4 = vcmask (!%p138_p2), 523264   ;;  %vm243_vm5 = vcmask (!%p138_p2), 785408  }
   0x8   : > { %483 = vmatprep.subr.bf16.mxu0 (!%p138_p2), %v482_v2  ;;  %v494_v14 = vpack.c.bf16 (!%p138_p2), %v253_v9, %v252_v8  ;;  %v254_v26 = vld [vmem:[%s695_s1 + $0x40] sm:$0xff] (!%p138_p2)  ;;  %v255_v27 = vld [vmem:[%s695_s1 + $0x48] sm:$0xff] (!%p138_p2)  ;;  %v256_v45 = vld [vmem:[%s695_s1 + $0x50] sm:$0xff] (!%p138_p2)  ;;  %vm352_vm6 = vcmask (!%p138_p2), 125952  }
   0x9   : > { %485 = vmatpush3.bf16.msra.mxu0 (!%p138_p2), %v482_v2  ;;  %v498_v37 = vpack.c.bf16 (!%p138_p2), %v255_v27, %v254_v26  ;;  %v257_v46 = vld [vmem:[%s695_s1 + $0x58] sm:$0xff] (!%p138_p2)  ;;  %v258_v55 = vld [vmem:[%s695_s1 + $0x60] sm:$0xff] (!%p138_p2)  ;;  %v259_v56 = vld [vmem:[%s695_s1 + $0x68] sm:$0xff] (!%p138_p2) }
   0xa   : > { %487 = vmatprep.subr.bf16.mxu0 (!%p138_p2), %v486_v5  ;;  %v502_v52 = vpack.c.bf16 (!%p138_p2), %v257_v46, %v256_v45  ;;  %v506_v57 = vpack.c.bf16 (!%p138_p2), %v259_v56, %v258_v55  ;;  %v260_v58 = vld [vmem:[%s695_s1 + $0x70] sm:$0xff] (!%p138_p2)  ;;  %v261_v59 = vld [vmem:[%s695_s1 + $0x78] sm:$0xff] (!%p138_p2) }
   0xb   : > { %v510_v60 = vpack.c.bf16 (!%p138_p2), %v261_v59, %v260_v58 }
   0xd   : > { %s701_s13 = smov (!%p161_p3, %s412_s13), 1  ;;  %489 = vmatpush3.bf16.msra.mxu0 %v486_v5 }
   0xe   : > { %s514_s26 = smul.u32 40, %s701_s13  ;;  %491 = vmatprep.subr.bf16.mxu0 %v490_v10  ;;  %s428_s30 = sshll.u32 %s701_s13, 4 }
  0x10   : > { %s165_s6 = scalar_lea.vmem %s694_s0, %s514_s26 }
  0x11   : > { %v619_v11 = vld [vmem:[%s165_s6] sm:$0x1f]  ;;  %v621_v12 = vld [vmem:[%s165_s6 + $0x8] sm:$0x1f]  ;;  %v623_v13 = vld [vmem:[%s165_s6 + $0x10] sm:$0x1f]  ;;  %493 = vmatpush3.bf16.msra.mxu0 %v490_v10 }
  0x12   : > { %v625_v15 = vld [vmem:[%s165_s6 + $0x18] sm:$0x1f]  ;;  %v180_v16 = vcombine.high %v619_v11, %v619_v11  ;;  %v181_v17 = vcombine.high %v621_v12, %v621_v12  ;;  %v182_v18 = vcombine.high %v623_v13, %v623_v13  ;;  %v420_v19 = vrot.slane %v619_v11, 9  ;;  %v175_v20 = vld [vmem:[%s165_s6 + $0x20] sm:$0x1f]  ;;  %495 = vmatprep.subr.bf16.mxu0 %v494_v14  ;;  %s170_s6 = scalar_lea.vmem %s697_s3, %s428_s30 }
  0x13   : > { %v183_v21 = vcombine.high %v625_v15, %v625_v15  ;;  %v421_v23 = vrot.slane %v621_v12, 9  ;;  %v422_v24 = vrot.slane %v623_v13, 9  ;;  %v423_v25 = vrot.slane %v625_v15, 9 }
  0x14   : > { %v189_v28 = vrot.slane %v180_v16, 5  ;;  %v193_v29 = vrot.slane %v181_v17, 5  ;;  %v197_v30 = vrot.slane %v182_v18, 5  ;;  %v204_v32 = vcombine.high %v175_v20, %v175_v20 }
  0x15   : > { %v201_v31 = vrot.slane %v183_v21, 5  ;;  %v424_v33 = vrot.slane %v175_v20, 9  ;;  %v221_v40 = vcombine.low %v621_v12, %v623_v13  ;;  %v222_v43 = vcombine.low %v625_v15, %v175_v20  ;;  %497 = vmatpush3.bf16.msra.mxu0 %v494_v14 }
  0x16   : > { %v190_v34 = vsel %vm636_vm2, %v420_v19, %v189_v28  ;;  %v194_v35 = vsel %vm636_vm2, %v421_v23, %v193_v29  ;;  %v198_v36 = vsel %vm636_vm2, %v422_v24, %v197_v30  ;;  %v207_v41 = vrot.slane %v204_v32, 5  ;;  %499 = vmatprep.subr.bf16.mxu0 %v498_v37 }
  0x17   : > { %v202_v38 = vsel %vm636_vm2, %v423_v25, %v201_v31  ;;  %v213_v39 = vcombine.low %v190_v34, %v194_v35  ;;  %v229_v44 = vcombine.low %v194_v35, %v198_v36  ;;  %v209_v47 = vcombine.low %v619_v11, %v621_v12  ;;  %v425_v12 = vld [vmem:[%s696_s2] ss:$0 sm:$0xff] }
  0x18   : > { %v214_v42 = vcombine.low %v198_v36, %v202_v38  ;;  %v208_v48 = vsel %vm636_vm2, %v424_v33, %v207_v41  ;;  %v210_v49 = vcombine.low %v623_v13, %v625_v15  ;;  %v531_v53 = vpack.i.bf16 %v222_v43, %v221_v40 }
  0x19   : > { %v230_v51 = vcombine.low %v202_v38, %v208_v48  ;;  %501 = vmatpush3.bf16.msra.mxu0 %v498_v37 }
  0x1a   : > { %v526_v50 = vpack.i.bf16 %v214_v42, %v213_v39  ;;  %503 = vmatprep.subr.bf16.mxu0 %v502_v52 }
  0x1b   : > { %v536_v54 = vpack.i.bf16 %v230_v51, %v229_v44 }
  0x1c   : > { %527 = vrot.lane.b32.xlu0 %v526_v50, %s558_s17 }
  0x1d   : > { %537 = vrot.lane.b32.xlu1 %v536_v54, %s559_s22  ;;  %505 = vmatpush3.bf16.msra.mxu0 %v502_v52 }
  0x1e   : > { %507 = vmatprep.subr.bf16.mxu0 %v506_v57 }
  0x20   : > { %532 = vrot.lane.b32.xlu0 %v531_v53, %s560_s23 }
  0x21   : > { %509 = vmatpush3.bf16.msra.mxu0 %v506_v57 }
  0x22   : > { %511 = vmatprep.subr.bf16.mxu0 %v510_v60 }
  0x25   : > { %513 = vmatpush3.bf16.msra.mxu0 %v510_v60 }
  0x8e   : > { %v528_v61 = vpop.permute.xlu0 %527 }
  0x8f   : > { %v530_v62 = vunpack.i.h.bf16 %v528_v61  ;;  %v529_v63 = vunpack.i.l.bf16 %v528_v61  ;;  %v538_v0 = vpop.permute.xlu1 %537 }
  0x90   : > { %v540_v2 = vunpack.i.h.bf16 %v538_v0  ;;  %v539_v3 = vunpack.i.l.bf16 %v538_v0 }
  0x91   : > { %v238_v6 = vsel %vm237_vm3, %v209_v47, %v529_v63  ;;  %v239_v7 = vsel %vm237_vm3, %v210_v49, %v530_v62 }
  0x92   : > { %v533_v1 = vpop.permute.xlu0 %532 }
  0x93   : > { %v535_v4 = vunpack.i.h.bf16 %v533_v1  ;;  %v534_v5 = vunpack.i.l.bf16 %v533_v1 }
  0x95   : > { %v241_v8 = vsel %vm240_vm4, %v238_v6, %v534_v5  ;;  %v242_v9 = vsel %vm240_vm4, %v239_v7, %v535_v4 }
  0x96   : > { %v244_v10 = vsel %vm243_vm5, %v241_v8, %v539_v3  ;;  %v245_v11 = vsel %vm243_vm5, %v242_v9, %v540_v2 }
  0x97   : > { %479 = vmatprep.mubr.f32.mxu0 %v244_v10 }
  0x98   : > { %480 = vmatmul.mubr.f32.vlgmr.msra.gmra.mrb[0].mxu0 %v245_v11 }
 0x16b   : > { %v481_v13 = vpop.f32.mrb[0].mxu0 }
 0x16c   : > { %v341_v14 = vadd.f32 %v481_v13, %v425_v12  ;;  %v335_v15 = vpop.f32.mrb[1].mxu0 }
 0x16d   : > { %v336_v16 = vadd.f32 %v425_v12, %v335_v15 }
 0x16e   : > { %v345_v17 = vmax.f32 %v341_v14, 0.0 }
 0x16f   : > { %v344_v18 = vmax.f32 %v336_v16, 0.0 }
 0x170   : > { %v349_v19 = vcombine.high %v345_v17, %v345_v17  ;;  %355 = vst.msk [vmem:[%s170_s6 + $0x8] sm:$0xf] %vm352_vm6, %v345_v17 }
 0x171   : > { %v348_v20 = vcombine.high %v344_v18, %v344_v18  ;;  %353 = vst.msk [vmem:[%s170_s6] sm:$0xf] %vm352_vm6, %v344_v18 }
 0x172   : > { %356 = vst.msk [vmem:[%s170_s6 + $0xc] sm:$0xf] %vm352_vm6, %v349_v19 }
 0x173   : > { %354 = vst.msk [vmem:[%s170_s6 + $0x4] sm:$0xf] %vm352_vm6, %v348_v20 }
 0x174 PF: > { %s13_s12 = sadd.s32 1, %s556_s12  }
 0x175   : > { %p10_p4 = scmp.ge.s32.totalorder %s13_s12, 4  }
 0x177   :  { %12 = sbr.rel (!%p10_p4) target bundleno = 1 (0x1), region = 62 }

// kernel: encoder_flex_forward.5
= control target key start
LH: loop header
LB: loop body
LE: loop exit
PB: predicated region body
PF: predicated region fallthrough
CT: control target
= control target key end

     0   :  { %s682_s12 = smov 0   ;;  %s862_s0 = inlined_call_operand.vmem [shape: f32[2,9,9,16], index: 0, kind: input, shape index: {}]   ;;  %s863_s1 = inlined_call_operand.vmem [shape: f32[64,8], index: 1, kind: input, shape index: {}]   ;;  %s864_s2 = inlined_call_operand.vmem [shape: f32[1,8], index: 2, kind: input, shape index: {}]   ;;  %s865_s3 = inlined_call_operand.vmem [shape: f32[2,8,8,8], index: 3, kind: output, shape index: {}]  }
   0x1 LB: > { %s551_s13 = sadd.s32 4294967295, %s657_s12   ;;  %p555_p0 = scmp.ge.s32.totalorder %s657_s12, 1  ;;  %s657_s12 = sphi %s682_s12, %s13_s12  }
   0x2   : > { %p137_p1 = scmp.lt.s32.totalorder %s657_s12, 3 }
   0x4   : > { %p138_p2 = pnand %p555_p0, %p137_p1 }
   0x5   : > { %p161_p3 = scmp.lt.s32.totalorder (!%p138_p2), %s551_s13, 1  ;;  %v334_v0 = vld [vmem:[%s863_s1] sm:$0xff] (!%p138_p2)  ;;  %v335_v1 = vld [vmem:[%s863_s1 + $0x8] sm:$0xff] (!%p138_p2)  ;;  %v336_v3 = vld [vmem:[%s863_s1 + $0x10] sm:$0xff] (!%p138_p2)  ;;  %vm205_vm0 = vcmask (!%p138_p2), 1046528   ;;  %s659_s30 = smov (!%p138_p2), 32  }
   0x6   : > { %141 = sbr.rel (%p138_p2) target bundleno = 397 (0x18d), region = 32  ;;  %v615_v2 = vpack.c.bf16 (!%p138_p2), %v335_v1, %v334_v0  ;;  %v337_v4 = vld [vmem:[%s863_s1 + $0x18] sm:$0xff] (!%p138_p2)  ;;  %v338_v6 = vld [vmem:[%s863_s1 + $0x20] sm:$0xff] (!%p138_p2)  ;;  %v339_v7 = vld [vmem:[%s863_s1 + $0x28] sm:$0xff] (!%p138_p2)  ;;  %s660_s4 = smov (!%p138_p2), 16   ;;  %vm307_vm1 = vcmask (!%p138_p2), 130048  }
   0x7   : > { %v619_v5 = vpack.c.bf16 (!%p138_p2), %v337_v4, %v336_v3  ;;  %v623_v8 = vpack.c.bf16 (!%p138_p2), %v339_v7, %v338_v6  ;;  %v340_v29 = vld [vmem:[%s863_s1 + $0x30] sm:$0xff] (!%p138_p2)  ;;  %v341_v30 = vld [vmem:[%s863_s1 + $0x38] sm:$0xff] (!%p138_p2)  ;;  %s661_s9 = smov (!%p138_p2), 48   ;;  %vm316_vm2 = vcmask (!%p138_p2), 261120   ;;  %vm325_vm3 = vcmask (!%p138_p2), 392192  }
   0x8   : > { %616 = vmatprep.subr.bf16.mxu0 (!%p138_p2), %v615_v2  ;;  %631 = vmatprep.subr.bf16.mxu1 (!%p138_p2), %v615_v2  ;;  %v627_v31 = vpack.c.bf16 (!%p138_p2), %v341_v30, %v340_v29  ;;  %vm349_vm4 = vcmask (!%p138_p2), 523264   ;;  %vm487_vm5 = vcmask (!%p138_p2), 64512  }
   0x9   : > { %618 = vmatpush3.bf16.msra.mxu0 (!%p138_p2), %v615_v2  ;;  %635 = vmatpush3.bf16.msra.mxu1 (!%p138_p2), %v615_v2 }
   0xa   : > { %620 = vmatprep.subr.bf16.mxu0 (!%p138_p2), %v619_v5  ;;  %632 = vmatprep.subr.bf16.mxu1 (!%p138_p2), %v619_v5 }
   0xd   : > { %s867_s13 = smov (!%p161_p3, %s551_s13), 1  ;;  %622 = vmatpush3.bf16.msra.mxu0 %v619_v5  ;;  %636 = vmatpush3.bf16.msra.mxu1 %v619_v5 }
   0xe   : > { %s639_s22 = smul.u32 144, %s867_s13  ;;  %624 = vmatprep.subr.bf16.mxu0 %v623_v8  ;;  %633 = vmatprep.subr.bf16.mxu1 %v623_v8  ;;  %s570_s14 = sshll.u32 %s867_s13, 6 }
   0xf   : > { %s170_s17 = scalar_lea.vmem %s865_s3, %s570_s14 }
  0x10   : > { %s714_s29 = scalar_lea.vmem %s862_s0, %s639_s22 }
  0x11   : > { %v717_v9 = vld [vmem:[%s714_s29 + $0x50] sm:$0xff]  ;;  %v174_v11 = vld [vmem:[%s714_s29 + $0x18] sm:$0x1]  ;;  %v729_v14 = vld [vmem:[%s714_s29] sm:$0xff]  ;;  %626 = vmatpush3.bf16.msra.mxu0 %v623_v8  ;;  %637 = vmatpush3.bf16.msra.mxu1 %v623_v8 }
  0x12   : > { %v720_v10 = vld [vmem:[%s714_s29 + $0x10] sm:$0xff]  ;;  %267 = vrot.lane.b32.xlu1 %v717_v9, %s659_s30  ;;  %v210_v13 = vrot.slane %v174_v11, 1  ;;  %v172_v15 = vld [vmem:[%s714_s29 + $0x8] sm:$0x1]  ;;  %v221_v16 = vrot.slane %v717_v9, 1  ;;  %v206_v17 = vrot.slane %v729_v14, 1  ;;  %628 = vmatprep.subr.bf16.mxu0 %v627_v31 }
  0x13   : > { %259 = vrot.lane.b32.xlu0 %v720_v10, %s659_s30  ;;  %v209_v12 = vrot.slane %v720_v10, 1  ;;  %v207_v18 = vrot.slane %v172_v15, 1  ;;  %v182_v19 = vld [vmem:[%s714_s29 + $0x58] sm:$0x1]  ;;  %v736_v20 = vld [vmem:[%s714_s29 + $0x40] sm:$0xff]  ;;  %634 = vmatprep.subr.bf16.mxu1 %v627_v31  ;;  %v773_v42 = vld [vmem:[%s714_s29 + $0x70] sm:$0xff] }
  0x14   : > { %v222_v22 = vrot.slane %v182_v19, 1  ;;  %v180_v23 = vld [vmem:[%s714_s29 + $0x48] sm:$0x1]  ;;  %v218_v24 = vrot.slane %v736_v20, 1  ;;  %v755_v32 = vld [vmem:[%s714_s29 + $0x60] sm:$0xff]  ;;  %v777_v44 = vld [vmem:[%s714_s29 + $0x30] sm:$0xff] }
  0x15   : > { %v211_v21 = vsel %vm205_vm0, %v209_v12, %v210_v13  ;;  %v208_v25 = vsel %vm205_vm0, %v206_v17, %v207_v18  ;;  %v219_v26 = vrot.slane %v180_v23, 1  ;;  %v758_v33 = vld [vmem:[%s714_s29 + $0x20] sm:$0xff]  ;;  %v184_v34 = vld [vmem:[%s714_s29 + $0x68] sm:$0x1]  ;;  %630 = vmatpush3.bf16.msra.mxu0 %v627_v31  ;;  %638 = vmatpush3.bf16.msra.mxu1 %v627_v31  ;;  %v224_v36 = vrot.slane %v755_v32, 1 }
  0x16   : > { %237 = vrot.lane.b32.xlu1 %v211_v21, %s660_s4  ;;  %v223_v27 = vsel %vm205_vm0, %v221_v16, %v222_v22  ;;  %v176_v35 = vld [vmem:[%s714_s29 + $0x28] sm:$0x1]  ;;  %v212_v37 = vrot.slane %v758_v33, 1  ;;  %v225_v38 = vrot.slane %v184_v34, 1  ;;  %v186_v43 = vld [vmem:[%s714_s29 + $0x78] sm:$0x1] }
  0x17   : > { %235 = vrot.lane.b32.xlu0 %v208_v25, %s660_s4  ;;  %v220_v28 = vsel %vm205_vm0, %v218_v24, %v219_v26  ;;  %v213_v39 = vrot.slane %v176_v35, 1  ;;  %v178_v45 = vld [vmem:[%s714_s29 + $0x38] sm:$0x1]  ;;  %v227_v46 = vrot.slane %v773_v42, 1  ;;  %v228_v47 = vrot.slane %v186_v43, 1  ;;  %v187_v52 = vld [vmem:[%s714_s29 + $0x80] sm:$0xff] }
  0x18   : > { %v226_v40 = vsel %vm205_vm0, %v224_v36, %v225_v38  ;;  %v215_v48 = vrot.slane %v777_v44, 1  ;;  %v216_v49 = vrot.slane %v178_v45, 1  ;;  %v188_v53 = vld [vmem:[%s714_s29 + $0x88] sm:$0x1]  ;;  %v232_v54 = vrot.slane %v187_v52, 1 }
  0x19   : > { %v214_v41 = vsel %vm205_vm0, %v212_v37, %v213_v39  ;;  %v229_v50 = vsel %vm205_vm0, %v227_v46, %v228_v47  ;;  %v233_v55 = vrot.slane %v188_v53, 1 }
  0x1a   : > { %245 = vrot.lane.b32.xlu1 %v223_v27, %s660_s4  ;;  %v217_v51 = vsel %vm205_vm0, %v215_v48, %v216_v49 }
  0x1b   : > { %243 = vrot.lane.b32.xlu0 %v220_v28, %s660_s4  ;;  %v234_v56 = vsel %vm205_vm0, %v232_v54, %v233_v55 }
  0x1e   : > { %269 = vrot.lane.b32.xlu1 %v755_v32, %s659_s30 }
  0x1f   : > { %261 = vrot.lane.b32.xlu0 %v758_v33, %s659_s30 }
  0x22   : > { %291 = vrot.lane.b32.xlu1 %v223_v27, %s661_s9 }
  0x23   : > { %283 = vrot.lane.b32.xlu0 %v211_v21, %s661_s9 }
  0x26   : > { %293 = vrot.lane.b32.xlu1 %v226_v40, %s661_s9 }
  0x27   : > { %285 = vrot.lane.b32.xlu0 %v214_v41, %s661_s9 }
  0x2a   : > { %247 = vrot.lane.b32.xlu1 %v226_v40, %s660_s4 }
  0x2b   : > { %239 = vrot.lane.b32.xlu0 %v214_v41, %s660_s4  ;;  %v559_v41 = vld [vmem:[%s864_s2] ss:$0 sm:$0xff] }
  0x2e   : > { %249 = vrot.lane.b32.xlu1 %v229_v50, %s660_s4 }
  0x2f   : > { %241 = vrot.lane.b32.xlu0 %v217_v51, %s660_s4 }
  0x32   : > { %271 = vrot.lane.b32.xlu1 %v773_v42, %s659_s30 }
  0x33   : > { %263 = vrot.lane.b32.xlu0 %v777_v44, %s659_s30 }
  0x36   : > { %273 = vrot.lane.b32.xlu1 %v187_v52, %s659_s30 }
  0x37   : > { %265 = vrot.lane.b32.xlu0 %v736_v20, %s659_s30 }
  0x3a   : > { %295 = vrot.lane.b32.xlu1 %v229_v50, %s661_s9 }
  0x3b   : > { %287 = vrot.lane.b32.xlu0 %v217_v51, %s661_s9 }
  0x3e   : > { %297 = vrot.lane.b32.xlu1 %v234_v56, %s661_s9 }
  0x3f   : > { %289 = vrot.lane.b32.xlu0 %v220_v28, %s661_s9 }
  0x84   : > { %v268_v57 = vpop.permute.xlu1 %267 }
  0x85   : > { %v260_v58 = vpop.permute.xlu0 %259 }
  0x88   : > { %v238_v59 = vpop.permute.xlu1 %237 }
  0x89   : > { %v236_v60 = vpop.permute.xlu0 %235  ;;  %v309_v11 = vsel %vm307_vm1, %v720_v10, %v238_v59 }
  0x8a   : > { %v308_v1 = vsel %vm307_vm1, %v729_v14, %v236_v60 }
  0x8b   : > { %v317_v5 = vsel %vm316_vm2, %v308_v1, %v260_v58 }
  0x8c   : > { %v246_v61 = vpop.permute.xlu1 %245 }
  0x8d   : > { %v244_v62 = vpop.permute.xlu0 %243  ;;  %v313_v12 = vsel %vm307_vm1, %v717_v9, %v246_v61 }
  0x8e   : > { %v312_v2 = vsel %vm307_vm1, %v736_v20, %v244_v62 }
  0x8f   : > { %v321_v6 = vsel %vm316_vm2, %v312_v2, %v268_v57 }
  0x90   : > { %v270_v63 = vpop.permute.xlu1 %269 }
  0x91   : > { %v262_v0 = vpop.permute.xlu0 %261  ;;  %v322_v13 = vsel %vm316_vm2, %v313_v12, %v270_v63 }
  0x92   : > { %v318_v14 = vsel %vm316_vm2, %v309_v11, %v262_v0 }
  0x94   : > { %v292_v3 = vpop.permute.xlu1 %291 }
  0x95   : > { %v284_v4 = vpop.permute.xlu0 %283  ;;  %v330_v8 = vsel %vm325_vm3, %v321_v6, %v292_v3 }
  0x96   : > { %v326_v7 = vsel %vm325_vm3, %v317_v5, %v284_v4  ;;  %609 = vmatprep.mubr.msk.f32.mxu1 %vm349_vm4, %v330_v8 }
  0x97   : > { %603 = vmatprep.mubr.msk.f32.mxu0 %vm349_vm4, %v326_v7 }
  0x98   : > { %v294_v15 = vpop.permute.xlu1 %293 }
  0x99   : > { %v286_v16 = vpop.permute.xlu0 %285  ;;  %v331_v17 = vsel %vm325_vm3, %v322_v13, %v294_v15 }
  0x9a   : > { %v327_v18 = vsel %vm325_vm3, %v318_v14, %v286_v16  ;;  %610 = vmatmul.mubr.msk.f32.vlgmr.msra.gmra.mrb[0].mxu1 %vm349_vm4, %v331_v17 }
  0x9b   : > { %604 = vmatmul.mubr.msk.f32.vlgmr.msra.gmra.mrb[0].mxu0 %vm349_vm4, %v327_v18 }
  0x9c   : > { %v248_v19 = vpop.permute.xlu1 %247 }
  0x9d   : > { %v240_v20 = vpop.permute.xlu0 %239  ;;  %v314_v25 = vsel %vm307_vm1, %v755_v32, %v248_v19 }
  0x9e   : > { %v310_v26 = vsel %vm307_vm1, %v758_v33, %v240_v20 }
  0xa0   : > { %v250_v10 = vpop.permute.xlu1 %249 }
  0xa1   : > { %v242_v21 = vpop.permute.xlu0 %241  ;;  %v315_v32 = vsel %vm307_vm1, %v773_v42, %v250_v10 }
  0xa2   : > { %v311_v33 = vsel %vm307_vm1, %v777_v44, %v242_v21 }
  0xa4   : > { %v272_v22 = vpop.permute.xlu1 %271 }
  0xa5   : > { %v264_v9 = vpop.permute.xlu0 %263  ;;  %v323_v27 = vsel %vm316_vm2, %v314_v25, %v272_v22 }
  0xa6   : > { %v319_v28 = vsel %vm316_vm2, %v310_v26, %v264_v9 }
  0xa8   : > { %v274_v23 = vpop.permute.xlu1 %273 }
  0xa9   : > { %v266_v24 = vpop.permute.xlu0 %265  ;;  %v324_v35 = vsel %vm316_vm2, %v315_v32, %v274_v23 }
  0xaa   : > { %v320_v36 = vsel %vm316_vm2, %v311_v33, %v266_v24 }
  0xac   : > { %v296_v29 = vpop.permute.xlu1 %295 }
  0xad   : > { %v288_v30 = vpop.permute.xlu0 %287  ;;  %v332_v31 = vsel %vm325_vm3, %v323_v27, %v296_v29 }
  0xae   : > { %v328_v34 = vsel %vm325_vm3, %v319_v28, %v288_v30  ;;  %612 = vmatprep.mubr.msk.f32.mxu1 %vm349_vm4, %v332_v31 }
  0xaf   : > { %606 = vmatprep.mubr.msk.f32.mxu0 %vm349_vm4, %v328_v34 }
  0xb0   : > { %v298_v37 = vpop.permute.xlu1 %297 }
  0xb1   : > { %v290_v38 = vpop.permute.xlu0 %289  ;;  %v333_v39 = vsel %vm325_vm3, %v324_v35, %v298_v37 }
  0xb2   : > { %v329_v40 = vsel %vm325_vm3, %v320_v36, %v290_v38  ;;  %613 = vmatmul.mubr.msk.f32.gmra.mrb[2].mxu1 %vm349_vm4, %v333_v39 }
  0xb3   : > { %607 = vmatmul.mubr.msk.f32.gmra.mrb[2].mxu0 %vm349_vm4, %v329_v40 }
 0x16d   : > { %v611_v43 = vpop.f32.mrb[0].mxu1 }
 0x16e   : > { %v605_v42 = vpop.f32.mrb[0].mxu0  ;;  %v466_v45 = vadd.f32 %v611_v43, %v559_v41  ;;  %v460_v47 = vpop.f32.mrb[1].mxu1 }
 0x16f   : > { %v446_v44 = vadd.f32 %v605_v42, %v559_v41  ;;  %v440_v46 = vpop.f32.mrb[1].mxu0  ;;  %v461_v49 = vadd.f32 %v559_v41, %v460_v47 }
 0x170   : > { %v441_v48 = vadd.f32 %v559_v41, %v440_v46  ;;  %v484_v51 = vmax.f32 %v466_v45, 0.0 }
 0x171   : > { %v480_v50 = vmax.f32 %v446_v44, 0.0  ;;  %v483_v53 = vmax.f32 %v461_v49, 0.0 }
 0x172   : > { %v479_v52 = vmax.f32 %v441_v48, 0.0  ;;  %493 = vst.msk [vmem:[%s170_s17 + $0x28] sm:$0xff] %vm487_vm5, %v484_v51 }
 0x173   : > { %489 = vst.msk [vmem:[%s170_s17 + $0x8] sm:$0xff] %vm487_vm5, %v480_v50  ;;  %492 = vst.msk [vmem:[%s170_s17 + $0x20] sm:$0xff] %vm487_vm5, %v483_v53 }
 0x174   : > { %488 = vst.msk [vmem:[%s170_s17] sm:$0xff] %vm487_vm5, %v479_v52 }
 0x185   : > { %v614_v55 = vpop.f32.mrb[2].mxu1 }
 0x186   : > { %v608_v54 = vpop.f32.mrb[2].mxu0  ;;  %v476_v57 = vadd.f32 %v614_v55, %v559_v41  ;;  %v470_v59 = vpop.f32.mrb[3].mxu1 }
 0x187   : > { %v456_v56 = vadd.f32 %v608_v54, %v559_v41  ;;  %v450_v58 = vpop.f32.mrb[3].mxu0  ;;  %v471_v61 = vadd.f32 %v559_v41, %v470_v59 }
 0x188   : > { %v451_v60 = vadd.f32 %v559_v41, %v450_v58  ;;  %v486_v63 = vmax.f32 %v476_v57, 0.0 }
 0x189   : > { %v482_v62 = vmax.f32 %v456_v56, 0.0  ;;  %v485_v1 = vmax.f32 %v471_v61, 0.0 }
 0x18a   : > { %v481_v0 = vmax.f32 %v451_v60, 0.0  ;;  %495 = vst.msk [vmem:[%s170_s17 + $0x38] sm:$0xff] %vm487_vm5, %v486_v63 }
 0x18b   : > { %491 = vst.msk [vmem:[%s170_s17 + $0x18] sm:$0xff] %vm487_vm5, %v482_v62  ;;  %494 = vst.msk [vmem:[%s170_s17 + $0x30] sm:$0xff] %vm487_vm5, %v485_v1 }
 0x18c   : > { %490 = vst.msk [vmem:[%s170_s17 + $0x10] sm:$0xff] %vm487_vm5, %v481_v0 }
 0x18d PF: > { %s13_s12 = sadd.s32 1, %s657_s12  }
 0x18e   : > { %p10_p4 = scmp.ge.s32.totalorder %s13_s12, 4  }
 0x190   :  { %12 = sbr.rel (!%p10_p4) target bundleno = 1 (0x1), region = 62 }

// kernel: encoder_flex_forward.7
= control target key start
LH: loop header
LB: loop body
LE: loop exit
PB: predicated region body
PF: predicated region fallthrough
CT: control target
= control target key end

     0   :  { %s571_s12 = smov 0   ;;  %s737_s0 = inlined_call_operand.vmem [shape: f32[2,3,3,64], index: 0, kind: input, shape index: {}]   ;;  %s738_s1 = inlined_call_operand.vmem [shape: f32[256,32], index: 1, kind: input, shape index: {}]   ;;  %s739_s2 = inlined_call_operand.vmem [shape: f32[1,32], index: 2, kind: input, shape index: {}]   ;;  %s740_s3 = inlined_call_operand.vmem [shape: f32[2,2,2,32], index: 3, kind: output, shape index: {}]  }
   0x1 LB: > { %s441_s13 = sadd.s32 4294967295, %s547_s12   ;;  %p445_p0 = scmp.ge.s32.totalorder %s547_s12, 1  ;;  %s547_s12 = sphi %s571_s12, %s13_s12  }
   0x2   : > { %p137_p1 = scmp.lt.s32.totalorder %s547_s12, 3 }
   0x4   : > { %p138_p2 = pnand %p445_p0, %p137_p1 }
   0x5   : > { %p161_p3 = scmp.lt.s32.totalorder (!%p138_p2), %s441_s13, 1  ;;  %v179_v0 = vlaneseq (!%p138_p2)  ;;  %v549_v1 = vmov (!%p138_p2), 1983009808   ;;  %v279_v3 = vld [vmem:[%s738_s1 + $0x80] sm:$0xff] (!%p138_p2)  ;;  %v280_v4 = vld [vmem:[%s738_s1 + $0x88] sm:$0xff] (!%p138_p2)  ;;  %vm192_vm0 = vcmask (!%p138_p2), 1040384  }
   0x6   : > { %141 = sbr.rel (%p138_p2) target bundleno = 373 (0x175), region = 32  ;;  %v177_v2 = vunpack.c.l.s4 (!%p138_p2), %v549_v1  ;;  %vm193_vm1 = vcmask (!%p138_p2), 1042434   ;;  %v491_v6 = vpack.c.bf16 (!%p138_p2), %v280_v4, %v279_v3  ;;  %v263_v7 = vld [vmem:[%s738_s1] sm:$0xff] (!%p138_p2)  ;;  %v264_v8 = vld [vmem:[%s738_s1 + $0x8] sm:$0xff] (!%p138_p2)  ;;  %v281_v11 = vld [vmem:[%s738_s1 + $0x90] sm:$0xff] (!%p138_p2)  ;;  %vm195_vm3 = vcmask (!%p138_p2), 1044484  }
   0x7   : > { %v180_v5 = vshrl.u32 (!%p138_p2), %v179_v0, 7  ;;  %v493_v10 = vpack.c.bf16 (!%p138_p2), %v264_v8, %v263_v7  ;;  %v282_v12 = vld [vmem:[%s738_s1 + $0x98] sm:$0xff] (!%p138_p2)  ;;  %v265_v14 = vld [vmem:[%s738_s1 + $0x10] sm:$0xff] (!%p138_p2)  ;;  %v283_v16 = vld [vmem:[%s738_s1 + $0xa0] sm:$0xff] (!%p138_p2)  ;;  %vm197_vm4 = vcmask (!%p138_p2), 1046534   ;;  %s550_s20 = smov (!%p138_p2), 64  }
   0x8   : > { %v178_v9 = vunpack.c.0.s8 (!%p138_p2), %v177_v2  ;;  %492 = vmatprep.subr.bf16.mxu0 (!%p138_p2), %v491_v6  ;;  %v495_v13 = vpack.c.bf16 (!%p138_p2), %v282_v12, %v281_v11  ;;  %v266_v15 = vld [vmem:[%s738_s1 + $0x18] sm:$0xff] (!%p138_p2)  ;;  %vm613_vm2 = vmor (!%p138_p2), %vm192_vm0, %vm193_vm1  ;;  %v284_v20 = vld [vmem:[%s738_s1 + $0xa8] sm:$0xff] (!%p138_p2)  ;;  %vm260_vm7 = vcmask (!%p138_p2), 523264   ;;  %vm383_vm8 = vcmask (!%p138_p2), 254976  }
   0x9   : > { %494 = vmatpush3.bf16.msra.mxu0 (!%p138_p2), %v493_v10  ;;  %v497_v19 = vpack.c.bf16 (!%p138_p2), %v266_v15, %v265_v14  ;;  %v267_v21 = vld [vmem:[%s738_s1 + $0x20] sm:$0xff] (!%p138_p2)  ;;  %v499_v22 = vpack.c.bf16 (!%p138_p2), %v284_v20, %v283_v16  ;;  %v268_v23 = vld [vmem:[%s738_s1 + $0x28] sm:$0xff] (!%p138_p2)  ;;  %v285_v24 = vld [vmem:[%s738_s1 + $0xb0] sm:$0xff] (!%p138_p2) }
   0xa   : > { %v609_v17 = vsub.s32 (!%p138_p2), %v178_v9, %v180_v5  ;;  %496 = vmatprep.subr.bf16.mxu0 (!%p138_p2), %v495_v13  ;;  %v286_v25 = vld [vmem:[%s738_s1 + $0xb8] sm:$0xff] (!%p138_p2)  ;;  %vm196_vm5 = vmor (!%p138_p2), %vm613_vm2, %vm195_vm3  ;;  %v501_v33 = vpack.c.bf16 (!%p138_p2), %v268_v23, %v267_v21  ;;  %v269_v40 = vld [vmem:[%s738_s1 + $0x30] sm:$0xff] (!%p138_p2) }
   0xb   : > { %v503_v34 = vpack.c.bf16 (!%p138_p2), %v286_v25, %v285_v24  ;;  %v270_v41 = vld [vmem:[%s738_s1 + $0x38] sm:$0xff] (!%p138_p2)  ;;  %vm661_vm6 = vmor (!%p138_p2), %vm196_vm5, %vm197_vm4  ;;  %v287_v45 = vld [vmem:[%s738_s1 + $0xc0] sm:$0xff] (!%p138_p2) }
   0xc   : > { %v288_v46 = vld [vmem:[%s738_s1 + $0xc8] sm:$0xff] (!%p138_p2)  ;;  %v505_v50 = vpack.c.bf16 (!%p138_p2), %v270_v41, %v269_v40  ;;  %v271_v54 = vld [vmem:[%s738_s1 + $0x40] sm:$0xff] (!%p138_p2)  ;;  %v289_v58 = vld [vmem:[%s738_s1 + $0xd0] sm:$0xff] (!%p138_p2) }
   0xd   : > { %s746_s13 = smov (!%p161_p3, %s441_s13), 1  ;;  %498 = vmatpush3.bf16.msra.mxu0 %v497_v19  ;;  %v507_v53 = vpack.c.bf16 %v288_v46, %v287_v45  ;;  %v272_v55 = vld [vmem:[%s738_s1 + $0x48] sm:$0xff]  ;;  %v290_v59 = vld [vmem:[%s738_s1 + $0xd8] sm:$0xff]  ;;  %v273_v1 = vld [vmem:[%s738_s1 + $0x50] sm:$0xff] }
   0xe   : > { %s523_s26 = smul.u32 12, %s746_s13  ;;  %500 = vmatprep.subr.bf16.mxu0 %v499_v22  ;;  %v509_v62 = vpack.c.bf16 %v272_v55, %v271_v54  ;;  %v511_v0 = vpack.c.bf16 %v290_v59, %v289_v58  ;;  %v274_v2 = vld [vmem:[%s738_s1 + $0x58] sm:$0xff]  ;;  %v291_v3 = vld [vmem:[%s738_s1 + $0xe0] sm:$0xff]  ;;  %v292_v4 = vld [vmem:[%s738_s1 + $0xe8] sm:$0xff]  ;;  %s455_s8 = sshll.u32 %s746_s13, 2 }
   0xf   : > { %v513_v6 = vpack.c.bf16 %v274_v2, %v273_v1  ;;  %v515_v7 = vpack.c.bf16 %v292_v4, %v291_v3  ;;  %v275_v8 = vld [vmem:[%s738_s1 + $0x60] sm:$0xff]  ;;  %v276_v9 = vld [vmem:[%s738_s1 + $0x68] sm:$0xff]  ;;  %v293_v10 = vld [vmem:[%s738_s1 + $0xf0] sm:$0xff]  ;;  %s170_s11 = scalar_lea.vmem %s740_s3, %s455_s8 }
  0x10   : > { %s165_s14 = scalar_lea.vmem %s737_s0, %s523_s26  ;;  %v294_v11 = vld [vmem:[%s738_s1 + $0xf8] sm:$0xff]  ;;  %v517_v12 = vpack.c.bf16 %v276_v9, %v275_v8  ;;  %v277_v14 = vld [vmem:[%s738_s1 + $0x70] sm:$0xff] }
  0x11   : > { %v635_v26 = vld [vmem:[%s165_s14] sm:$0x7]  ;;  %v637_v27 = vld [vmem:[%s165_s14 + $0x4] sm:$0x7]  ;;  %v639_v28 = vld [vmem:[%s165_s14 + $0x8] sm:$0x7]  ;;  %502 = vmatpush3.bf16.msra.mxu0 %v501_v33  ;;  %v519_v13 = vpack.c.bf16 %v294_v11, %v293_v10 }
  0x12   : > { %v182_v29 = vrot.slane %v635_v26, %v609_v17  ;;  %v190_v30 = vrot.slane %v637_v27, %v609_v17  ;;  %v214_v31 = vrot.slane %v639_v28, %v609_v17  ;;  %v240_v32 = vcombine.low %v637_v27, %v639_v28  ;;  %504 = vmatprep.subr.bf16.mxu0 %v503_v34  ;;  %v278_v15 = vld [vmem:[%s738_s1 + $0x78] sm:$0xff] }
  0x13   : > { %v220_v35 = vcombine.low %v635_v26, %v637_v27  ;;  %v521_v16 = vpack.c.bf16 %v278_v15, %v277_v14  ;;  %v452_v26 = vld [vmem:[%s739_s2] ss:$0 sm:$0xff] }
  0x14   : > { %v183_v36 = vcombine.high %v182_v29, %v182_v29  ;;  %v191_v37 = vcombine.high %v190_v30, %v190_v30  ;;  %v449_v38 = vrot.slane %v182_v29, 9  ;;  %v450_v39 = vrot.slane %v190_v30, 9 }
  0x15   : > { %v215_v43 = vcombine.high %v214_v31, %v214_v31  ;;  %v451_v44 = vrot.slane %v214_v31, 9  ;;  %506 = vmatpush3.bf16.msra.mxu0 %v505_v50  ;;  %v247_v18 = vrot.slane %v240_v32, %v609_v17  ;;  %v227_v19 = vrot.slane %v220_v35, %v609_v17 }
  0x16   : > { %v201_v47 = vrot.slane %v183_v36, 7  ;;  %v205_v48 = vrot.slane %v191_v37, 7  ;;  %508 = vmatprep.subr.bf16.mxu0 %v507_v53 }
  0x17   : > { %v218_v49 = vrot.slane %v215_v43, 7 }
  0x18   : > { %v202_v51 = vsel %vm661_vm6, %v449_v38, %v201_v47  ;;  %v206_v52 = vsel %vm661_vm6, %v450_v39, %v205_v48 }
  0x19   : > { %v219_v56 = vsel %vm661_vm6, %v451_v44, %v218_v49  ;;  %v229_v57 = vcombine.low %v202_v51, %v206_v52  ;;  %510 = vmatpush3.bf16.msra.mxu0 %v509_v62 }
  0x1a   : > { %v249_v60 = vcombine.low %v206_v52, %v219_v56  ;;  %512 = vmatprep.subr.bf16.mxu0 %v511_v0 }
  0x1b   : > { %v236_v61 = vrot.slane %v229_v57, %v609_v17 }
  0x1c   : > { %v256_v63 = vrot.slane %v249_v60, %v609_v17 }
  0x1d   : > { %514 = vmatpush3.bf16.msra.mxu0 %v513_v6 }
  0x1e   : > { %v534_v5 = vpack.i.bf16 %v236_v61, %v256_v63  ;;  %516 = vmatprep.subr.bf16.mxu0 %v515_v7 }
  0x20   : > { %535 = vrot.lane.b32.xlu0 %v534_v5, %s550_s20 }
  0x21   : > { %518 = vmatpush3.bf16.msra.mxu0 %v517_v12 }
  0x22   : > { %520 = vmatprep.subr.bf16.mxu0 %v519_v13 }
  0x25   : > { %522 = vmatpush3.bf16.msra.mxu0 %v521_v16 }
  0x92   : > { %v536_v20 = vpop.permute.xlu0 %535 }
  0x93   : > { %v538_v21 = vunpack.i.h.bf16 %v536_v20  ;;  %v537_v22 = vunpack.i.l.bf16 %v536_v20 }
  0x95   : > { %v262_v23 = vsel %vm260_vm7, %v247_v18, %v537_v22  ;;  %v261_v24 = vsel %vm260_vm7, %v227_v19, %v538_v21 }
  0x96   : > { %366 = vmatprep.mubr.f32.mxu0 %v262_v23 }
  0x97   : > { %367 = vmatmul.mubr.f32.vlgmr.msra.gmra.mrb[0].mxu0 %v261_v24 }
 0x16a   : > { %v488_v25 = vpop.f32.mrb[0].mxu0 }
 0x16b   : > { %v489_v29 = vpop.f32.mrb[1].mxu0 }
 0x16c   : > { %v490_v30 = vadd.f32 %v489_v29, %v488_v25 }
 0x16e   : > { %v369_v27 = vadd.f32 %v490_v30, %v452_v26 }
 0x170   : > { %v379_v28 = vrot.slane %v369_v27, %v609_v17 }
 0x172   : > { %v380_v31 = vcombine.high %v379_v28, %v379_v28  ;;  %384 = vst.msk [vmem:[%s170_s11] sm:$0x3] %vm383_vm8, %v379_v28 }
 0x174   : > { %385 = vst.msk [vmem:[%s170_s11 + $0x2] sm:$0x3] %vm383_vm8, %v380_v31 }
 0x175 PF: > { %s13_s12 = sadd.s32 1, %s547_s12  }
 0x176   : > { %p10_p4 = scmp.ge.s32.totalorder %s13_s12, 4  }
 0x178   :  { %12 = sbr.rel (!%p10_p4) target bundleno = 1 (0x1), region = 62 }

// kernel: encoder_flex_forward.9
= control target key start
LH: loop header
LB: loop body
LE: loop exit
PB: predicated region body
PF: predicated region fallthrough
CT: control target
= control target key end

     0   :  { %8 = vsyncpa [#allocation3], 0  ;;  %s1312_s0 = inlined_call_operand.vmem [shape: f32[2,4,4,32], index: 0, kind: input, shape index: {}]   ;;  %s1313_s1 = inlined_call_operand.vmem [shape: f32[288,16], index: 1, kind: input, shape index: {}]   ;;  %s1314_s2 = inlined_call_operand.vmem [shape: f32[16,32], index: 2, kind: input, shape index: {}]   ;;  %s1315_s3 = inlined_call_operand.hbm [shape: f32[2,2,2,32], index: 3, kind: output, shape index: {}]  }
   0x1   :  { %10 = vsyncpa [#allocation3 + $0x1], 0  ;;  %s1000_s12 = smov 0   ;;  %s1002_s13 = smov 0  }
   0x2   :  { %s1004_s14 = smov 0   ;;  %s1006_s15 = smov 0  }
   0x3 LB: > { %s1021_s16 = sadd.s32 4294967295, %s969_s15   ;;  %s718_s17 = sadd.s32 4294967294, %s969_s15   ;;  %s969_s15 = sphi %s1006_s15, %s1325_s15   ;;  %s965_s14 = sphi %s1004_s14, %s1324_s14   ;;  %s961_s13 = sphi %s1002_s13, %s1323_s13   ;;  %s957_s12 = sphi %s1000_s12, %s1322_s12  }
   0x4   : > { %s1025_s18 = sadd.s32 1, %s969_s15   ;;  %s91_s19 = sadd.s32 1, %s965_s14 }
   0x5   : > { %s88_s20 = ssub.s32 %s969_s15, %s1025_s18  ;;  %p101_p0 = scmp.ne.s32.totalorder %s965_s14, %s961_s13 }
   0x6   : > { %p89_p1 = scmp.eq.s32.totalorder %s88_s20, 0  ;;  %p102_p2 = scmp.eq.s32.totalorder %s1021_s16, 1 }
   0x7   : > { %p107_p3 = scmp.ne.s32.totalorder %s961_s13, %s957_s12  ;;  %p108_p4 = scmp.eq.s32.totalorder %s718_s17, 1 }
   0x8   : > { %s1036_s21 = scalar_select %p89_p1, %s965_s14, %s91_s19  }
   0x9   : > { %p1038_p5 = por %p102_p2, %p101_p0  ;;  %p1042_p6 = por %p108_p4, %p107_p3 }
   0xa   : > { %p721_p7 = scmp.ge.s32.totalorder %s969_s15, 1  ;;  %p140_p8 = scmp.lt.s32.totalorder %s969_s15, 3 }
   0xc   : > { %p141_p9 = pnand %p721_p7, %p140_p8 }
   0xd   : > { %p164_p10 = scmp.lt.s32.totalorder (!%p141_p9), %s1021_s16, 1  ;;  %v182_v0 = vlaneseq (!%p141_p9)  ;;  %vm195_vm0 = vcmask (!%p141_p9), 1040384   ;;  %vm196_vm1 = vcmask (!%p141_p9), 1042434   ;;  %v971_v1 = vmov (!%p141_p9), 1983009808   ;;  %v353_v3 = vld [vmem:[%s1313_s1 + $0x80] sm:$0xff] (!%p141_p9) }
   0xe   : > { %144 = sbr.rel (%p141_p9) target bundleno = 619 (0x26b), region = 32  ;;  %v180_v2 = vunpack.c.l.s4 (!%p141_p9), %v971_v1  ;;  %v354_v4 = vld [vmem:[%s1313_s1 + $0x88] sm:$0xff] (!%p141_p9)  ;;  %v337_v7 = vld [vmem:[%s1313_s1] sm:$0xff] (!%p141_p9)  ;;  %vm1062_vm2 = vmor (!%p141_p9), %vm195_vm0, %vm196_vm1  ;;  %vm198_vm3 = vcmask (!%p141_p9), 1044484   ;;  %vm200_vm4 = vcmask (!%p141_p9), 1046534   ;;  %s973_s8 = smov (!%p141_p9), 32  }
   0xf   : > { %v183_v5 = vshrl.u32 (!%p141_p9), %v182_v0, 7  ;;  %v804_v6 = vpack.c.bf16 (!%p141_p9), %v354_v4, %v353_v3  ;;  %v338_v8 = vld [vmem:[%s1313_s1 + $0x8] sm:$0xff] (!%p141_p9)  ;;  %v355_v12 = vld [vmem:[%s1313_s1 + $0x90] sm:$0xff] (!%p141_p9)  ;;  %v356_v13 = vld [vmem:[%s1313_s1 + $0x98] sm:$0xff] (!%p141_p9)  ;;  %vm974_vm7 = vmmov (!%p141_p9), 0   ;;  %s976_s26 = smov (!%p141_p9), 96  }
  0x10   : > { %v181_v9 = vunpack.c.0.s8 (!%p141_p9), %v180_v2  ;;  %v806_v11 = vpack.c.bf16 (!%p141_p9), %v338_v8, %v337_v7  ;;  %v808_v14 = vpack.c.bf16 (!%p141_p9), %v356_v13, %v355_v12  ;;  %v339_v15 = vld [vmem:[%s1313_s1 + $0x10] sm:$0xff] (!%p141_p9)  ;;  %v340_v16 = vld [vmem:[%s1313_s1 + $0x18] sm:$0xff] (!%p141_p9)  ;;  %v357_v17 = vld [vmem:[%s1313_s1 + $0xa0] sm:$0xff] (!%p141_p9)  ;;  %s977_s27 = smov (!%p141_p9), 64   ;;  %vm328_vm8 = vcmask (!%p141_p9), 261120   ;;  %s742_s17 = sshll.u32 (!%p141_p9), %s1021_s16, 6 }
  0x11   : > { %805 = vmatprep.subr.bf16.mxu0 (!%p141_p9), %v804_v6  ;;  %v810_v19 = vpack.c.bf16 (!%p141_p9), %v340_v16, %v339_v15  ;;  %v358_v20 = vld [vmem:[%s1313_s1 + $0xa8] sm:$0xff] (!%p141_p9)  ;;  %v341_v21 = vld [vmem:[%s1313_s1 + $0x20] sm:$0xff] (!%p141_p9)  ;;  %v359_v31 = vld [vmem:[%s1313_s1 + $0xb0] sm:$0xff] (!%p141_p9)  ;;  %vm330_vm9 = vcmask (!%p141_p9), 523264   ;;  %vm332_vm10 = vcmask (!%p141_p9), 785408   ;;  %vm553_vm11 = vcmask (!%p141_p9), 130048  }
  0x12   : > { %v1084_v18 = vsub.s32 (!%p141_p9), %v181_v9, %v183_v5  ;;  %807 = vmatpush3.bf16.msra.mxu0 (!%p141_p9), %v806_v11  ;;  %v342_v22 = vld [vmem:[%s1313_s1 + $0x28] sm:$0xff] (!%p141_p9)  ;;  %v812_v26 = vpack.c.bf16 (!%p141_p9), %v358_v20, %v357_v17  ;;  %v360_v33 = vld [vmem:[%s1313_s1 + $0xb8] sm:$0xff] (!%p141_p9)  ;;  %vm199_vm5 = vmor (!%p141_p9), %vm1062_vm2, %vm198_vm3  ;;  %vm639_vm12 = vcmask (!%p141_p9), 254976  }
  0x13   : > { %809 = vmatprep.subr.bf16.mxu0 (!%p141_p9), %v808_v14  ;;  %v814_v37 = vpack.c.bf16 (!%p141_p9), %v342_v22, %v341_v21  ;;  %v343_v38 = vld [vmem:[%s1313_s1 + $0x30] sm:$0xff] (!%p141_p9)  ;;  %v344_v39 = vld [vmem:[%s1313_s1 + $0x38] sm:$0xff] (!%p141_p9)  ;;  %v816_v42 = vpack.c.bf16 (!%p141_p9), %v360_v33, %v359_v31  ;;  %vm1133_vm6 = vmor (!%p141_p9), %vm199_vm5, %vm200_vm4 }
  0x14   : > { %v818_v51 = vpack.c.bf16 (!%p141_p9), %v344_v39, %v343_v38  ;;  %v361_v56 = vld [vmem:[%s1313_s1 + $0xc0] sm:$0xff] (!%p141_p9)  ;;  %v362_v57 = vld [vmem:[%s1313_s1 + $0xc8] sm:$0xff] (!%p141_p9)  ;;  %v363_v4 = vld [vmem:[%s1313_s1 + $0xd0] sm:$0xff] (!%p141_p9) }
  0x15   : > { %s165_s28 = scalar_select %p164_p10, %s1021_s16, 1  ;;  %v345_v62 = vld [vmem:[%s1313_s1 + $0x40] sm:$0xff]  ;;  %v346_v63 = vld [vmem:[%s1313_s1 + $0x48] sm:$0xff]  ;;  %v364_v5 = vld [vmem:[%s1313_s1 + $0xd8] sm:$0xff]  ;;  %v820_v9 = vpack.c.bf16 %v362_v57, %v361_v56 }
  0x16   : > { %811 = vmatpush3.bf16.msra.mxu0 %v810_v19  ;;  %v369_v10 = vld [vmem:[%s1313_s1 + $0x100] sm:$0xff]  ;;  %v370_v11 = vld [vmem:[%s1313_s1 + $0x108] sm:$0xff]  ;;  %v822_v14 = vpack.c.bf16 %v346_v63, %v345_v62  ;;  %v347_v15 = vld [vmem:[%s1313_s1 + $0x50] sm:$0xff]  ;;  %v824_v22 = vpack.c.bf16 %v364_v5, %v363_v4 }
  0x17   : > { %s741_s10 = sshll.u32 %s165_s28, 4  ;;  %813 = vmatprep.subr.bf16.mxu0 %v812_v26  ;;  %v348_v16 = vld [vmem:[%s1313_s1 + $0x58] sm:$0xff]  ;;  %v365_v17 = vld [vmem:[%s1313_s1 + $0xe0] sm:$0xff]  ;;  %v366_v26 = vld [vmem:[%s1313_s1 + $0xe8] sm:$0xff]  ;;  %v837_v31 = vpack.c.bf16 %v370_v11, %v369_v10 }
  0x18   : > { %s168_s29 = scalar_lea.vmem %s1312_s0, %s741_s10  ;;  %v828_v38 = vpack.c.bf16 %v366_v26, %v365_v17  ;;  %v517_v5 = vld [vmem:[%s1314_s2 + $0x8] sm:$0xff]  ;;  %s161_s10 = sand.u32 1, %s961_s13  }
  0x19   : > { %v1095_v23 = vld [vmem:[%s168_s29] sm:$0xf]  ;;  %v1097_v24 = vld [vmem:[%s168_s29 + $0x4] sm:$0xf]  ;;  %v1099_v25 = vld [vmem:[%s168_s29 + $0x8] sm:$0xf] }
  0x1a   : > { %v173_v27 = vmax.f32 %v1095_v23, 0.0  ;;  %v1103_v28 = vmax.f32 %v1097_v24, 0.0  ;;  %v175_v29 = vmax.f32 %v1099_v25, 0.0  ;;  %v172_v30 = vld [vmem:[%s168_s29 + $0xc] sm:$0xf]  ;;  %815 = vmatpush3.bf16.msra.mxu0 %v814_v37  ;;  %v826_v37 = vpack.c.bf16 %v348_v16, %v347_v15  ;;  %s722_s11 = sshll.u32 %s161_s10, 2 }
  0x1b   : > { %v176_v32 = vmax.f32 %v172_v30, 0.0  ;;  %817 = vmatprep.subr.bf16.mxu0 %v816_v42  ;;  %v372_v30 = vld [vmem:[%s1313_s1 + $0x118] sm:$0xff]  ;;  %v349_v42 = vld [vmem:[%s1313_s1 + $0x60] sm:$0xff]  ;;  %v534_v15 = vrot.slane %v1099_v25, %v1084_v18  ;;  %s163_s19 = scalar_lea.vmem [#allocation2], %s722_s11  ;;  %s978_s29 = smov [#allocation2]  }
  0x1c   : > { %v185_v34 = vrot.slane %v173_v27, %v1084_v18  ;;  %v193_v35 = vrot.slane %v1103_v28, %v1084_v18  ;;  %v1121_v36 = vrot.slane %v175_v29, %v1084_v18  ;;  %v267_v61 = vcombine.low %v1103_v28, %v175_v29  ;;  %s656_s20 = sshll.u32 %s163_s19, 4  ;;  %s911_s28 = sshll.u32 %s978_s29, 4  ;;  %s1267_s20 = int_to_ptr.vmem [resolvable:$true] %s656_s20  ;;  %s912_s28 = int_to_ptr.vmem [resolvable:$false] %s911_s28 }
  0x1d   : > { %v1130_v40 = vrot.slane %v176_v32, %v1084_v18  ;;  %v298_v41 = vcombine.low %v175_v29, %v176_v32  ;;  %v371_v29 = vld [vmem:[%s1313_s1 + $0x110] sm:$0xff]  ;;  %v535_v17 = vcombine.high %v534_v15, %v534_v15  ;;  %s907_s16 = scalar_lea.vmem %s1267_s20, 64  ;;  %s913_s30 = scalar_lea.vmem %s912_s28, 128 }
  0x1e   : > { %v186_v43 = vcombine.high %v185_v34, %v185_v34  ;;  %v194_v44 = vcombine.high %v193_v35, %v193_v35  ;;  %v725_v45 = vrot.slane %v185_v34, 9  ;;  %v726_v46 = vrot.slane %v193_v35, 9  ;;  %819 = vmatpush3.bf16.msra.mxu0 %v818_v51  ;;  %v352_v51 = vld [vmem:[%s1313_s1 + $0x78] sm:$0xff]  ;;  %p908_p11 = scmp.ne.s32.totalorder %s1267_s20, %s907_s16  ;;  %p914_p0 = scmp.lt.s32.totalorder %s1267_s20, %s912_s28 }
  0x1f   : > { %v730_v48 = vcombine.high %v193_v35, %v1121_v36  ;;  %v729_v49 = vcombine.high %v185_v34, %v193_v35  ;;  %v218_v50 = vcombine.high %v1121_v36, %v1121_v36  ;;  %v727_v54 = vrot.slane %v1121_v36, 9  ;;  %821 = vmatprep.subr.bf16.mxu0 %v820_v9  ;;  %p915_p1 = scmp.lt.s32.totalorder %s913_s30, %s907_s16 }
  0x20   : > { %v204_v52 = vrot.slane %v186_v43, 7  ;;  %v208_v53 = vrot.slane %v194_v44, 7  ;;  %v231_v55 = vcombine.high %v1130_v40, %v1130_v40  ;;  %v305_v58 = vrot.slane %v298_v41, %v1084_v18  ;;  %v350_v43 = vld [vmem:[%s1313_s1 + $0x68] sm:$0xff]  ;;  %p909_p12 = pnand %p908_p11, %p1038_p5 }
  0x21   : > { %v221_v59 = vrot.slane %v218_v50, 7  ;;  %v728_v60 = vrot.slane %v1130_v40, 9  ;;  %v294_v2 = vrot.slane %v730_v48, %v1084_v18  ;;  %v263_v7 = vrot.slane %v729_v49, %v1084_v18  ;;  %v351_v50 = vld [vmem:[%s1313_s1 + $0x70] sm:$0xff]  ;;  %p916_p2 = por %p915_p1, %p914_p0 }
  0x22   : > { %v205_v0 = vsel %vm1133_vm6, %v725_v45, %v204_v52  ;;  %v1162_v1 = vsel %vm1133_vm6, %v726_v46, %v208_v53  ;;  %v234_v3 = vrot.slane %v231_v55, 7  ;;  %v274_v20 = vrot.slane %v267_v61, %v1084_v18  ;;  %823 = vmatpush3.bf16.msra.mxu0 %v822_v14  ;;  %v367_v45 = vld [vmem:[%s1313_s1 + $0xf0] sm:$0xff]  ;;  %v368_v46 = vld [vmem:[%s1313_s1 + $0xf8] sm:$0xff]  ;;  %p910_p13 = pneg %p909_p12 }
  0x23   : > { %v245_v6 = vcombine.low %v205_v0, %v1162_v1  ;;  %v1175_v8 = vsel %vm1133_vm6, %v727_v54, %v221_v59  ;;  %v897_v33 = vpack.i.bf16 %v263_v7, %v305_v58  ;;  %v972_v35 = vmov 0.0|0.0   ;;  %825 = vmatprep.subr.bf16.mxu0 %v824_v22 }
  0x24   : > { %v235_v12 = vsel %vm1133_vm6, %v728_v60, %v234_v3  ;;  %v278_v13 = vcombine.low %v1162_v1, %v1175_v8  ;;  %836 = vmatprep.subr.bf16.mxu1 %v972_v35  ;;  %v840_v39 = vpack.c.bf16 %v372_v30, %v371_v29  ;;  %v236_v44 = vcombine.low %v173_v27, %v1103_v28  ;;  %v516_v1 = vld [vmem:[%s1314_s2] sm:$0xff]  ;;  %p917_p3 = pnand %p916_p2, %p910_p13 }
  0x25   : > { %v252_v19 = vrot.slane %v245_v6, %v1084_v18  ;;  %v309_v21 = vcombine.low %v1175_v8, %v235_v12  ;;  %838 = vmatpush3.bf16.msra.mxu1 %v837_v31  ;;  %v975_v48 = vmov 0.0   ;;  %v731_v49 = vcombine.high %v1121_v36, %v1130_v40 }
  0x26   : > { %839 = vmatprep.subr.bf16.mxu1 %v972_v35  ;;  %794 = vmatprep.mubr.msk.f32.mxu1 %vm974_vm7, %v975_v48  ;;  %v830_v23 = vpack.c.bf16 %v350_v43, %v349_v42  ;;  %v832_v28 = vpack.c.bf16 %v368_v46, %v367_v45  ;;  %v834_v36 = vpack.c.bf16 %v352_v51, %v351_v50  ;;  %v542_v22 = vrot.slane %v535_v17, 7 }
  0x27   : > { %v892_v32 = vpack.i.bf16 %v252_v19, %v294_v2  ;;  %v316_v34 = vrot.slane %v309_v21, %v1084_v18  ;;  %827 = vmatpush3.bf16.msra.mxu0 %v826_v37  ;;  %v327_v27 = vrot.slane %v731_v49, %v1084_v18  ;;  %v285_v55 = vrot.slane %v278_v13, %v1084_v18 }
  0x28   : > { %829 = vmatprep.subr.bf16.mxu0 %v828_v38  ;;  %v243_v56 = vrot.slane %v236_v44, %v1084_v18  ;;  %v843_v6 = vpack.c.bf16 %v517_v5, %v516_v1  ;;  %v526_v14 = vrot.slane %v1097_v24, %v1084_v18  ;;  %v734_v21 = vrot.slane %v534_v15, 9 }
  0x29   : > { %893 = vrot.lane.b32.xlu0 %v892_v32, %s973_s8  ;;  %v902_v41 = vpack.i.bf16 %v274_v20, %v316_v34  ;;  %841 = vmatpush3.bf16.msra.mxu1 %v840_v39 }
  0x2a   : > { %842 = vmatprep.subr.bf16.mxu1 %v972_v35  ;;  %v527_v16 = vcombine.high %v526_v14, %v526_v14  ;;  %v733_v19 = vrot.slane %v526_v14, 9  ;;  %v543_v29 = vsel %vm1133_vm6, %v734_v21, %v542_v22 }
  0x2b   : > { %903 = vrot.lane.b32.xlu1 %v902_v41, %s976_s26  ;;  %831 = vmatpush3.bf16.msra.mxu0 %v830_v23  ;;  %s1265_s26 = scalar_lea.hbm %s1315_s3, %s742_s17 }
  0x2c   : > { %795 = vmatmul.mubr.msk.f32.vlgmr.msra.gmra.mrb[0].mxu1 %vm328_vm8, %v327_v27  ;;  %833 = vmatprep.subr.bf16.mxu0 %v832_v28  ;;  %v538_v20 = vrot.slane %v527_v16, 7 }
  0x2d   : > { %898 = vrot.lane.b32.xlu0 %v897_v33, %s977_s27  ;;  %801 = vmatprep.mubr.msk.f32.mxu1 %vm974_vm7, %v975_v48  ;;  %s1269_s27 = scalar_lea.sflag [#allocation3], %s161_s10 }
  0x2e   : > { %844 = vmatpush3.bf16.msra.mxu1 %v843_v6  ;;  %v539_v26 = vsel %vm1133_vm6, %v733_v19, %v538_v20 }
  0x2f   : > { %835 = vmatpush3.bf16.msra.mxu0 %v834_v36  ;;  %v544_v30 = vcombine.low %v539_v26, %v543_v29 }
  0x31   : > { %v551_v24 = vrot.slane %v544_v30, %v1084_v18 }
  0x9b   : > { %v894_v40 = vpop.permute.xlu0 %893 }
  0x9c   : > { %v896_v52 = vunpack.i.h.bf16 %v894_v40  ;;  %v895_v53 = vunpack.i.l.bf16 %v894_v40 }
  0x9d   : > { %v904_v54 = vpop.permute.xlu1 %903 }
  0x9e   : > { %v906_v58 = vunpack.i.h.bf16 %v904_v54  ;;  %v905_v59 = vunpack.i.l.bf16 %v904_v54  ;;  %v334_v62 = vsel %vm328_vm8, %v285_v55, %v895_v53  ;;  %v329_v63 = vsel %vm328_vm8, %v243_v56, %v896_v52 }
  0x9f   : > { %v899_v57 = vpop.permute.xlu0 %898 }
  0xa0   : > { %v901_v60 = vunpack.i.h.bf16 %v899_v57  ;;  %v900_v61 = vunpack.i.l.bf16 %v899_v57 }
  0xa2   : > { %v335_v0 = vsel %vm330_vm9, %v334_v62, %v900_v61  ;;  %v331_v2 = vsel %vm330_vm9, %v329_v63, %v901_v60 }
  0xa3   : > { %v336_v3 = vsel %vm332_vm10, %v335_v0, %v905_v59  ;;  %v333_v4 = vsel %vm332_vm10, %v331_v2, %v906_v58 }
  0xa4   : > { %439 = vmatprep.mubr.f32.mxu0 %v336_v3 }
  0xa5   : > { %440 = vmatmul.mubr.f32.vlgmr.msra.gmra.mrb[0].mxu0 %v333_v4 }
  0xff   : > { %v511_v7 = vpop.f32.mrb[0].mxu1 }
 0x100   : > { %v796_v8 = vpop.f32.mrb[1].mxu1 }
 0x178   : > { %v775_v9 = vpop.f32.mrb[0].mxu0 }
 0x179   : > { %v776_v10 = vpop.f32.mrb[1].mxu0 }
 0x17a   : > { %v777_v11 = vadd.f32 %v776_v10, %v775_v9 }
 0x17c   : > { %v512_v12 = vadd.f32 %v777_v11, %v511_v7 }
 0x17e   : > { %v515_v13 = vmax.f32 %v512_v12, 0.0 }
 0x180   : > { %802 = vmatmul.mubr.msk.f32.vlgmr.msra.gmra.mrb[2].mxu1 %vm553_vm11, %v515_v13 }
 0x253   : > { %v623_v31 = vpop.f32.mrb[2].mxu1 }
 0x254   : > { %v624_v25 = vadd.f32 %v623_v31, %v551_v24  ;;  %v803_v32 = vpop.f32.mrb[3].mxu1 }
 0x256   : > { %v627_v33 = vmax.f32 %v624_v25, 0.0 }
 0x258   : > { %v635_v34 = vrot.slane %v627_v33, %v1084_v18 }
 0x25a   : > { %v636_v47 = vcombine.high %v635_v34, %v635_v34  ;;  %640 = vst.msk [vmem:[%s163_s19] sm:$0x3] %vm639_vm12, %v635_v34 }
 0x25c   : > { %641 = vst.msk [vmem:[%s163_s19 + $0x2] sm:$0x3] %vm639_vm12, %v636_v47 }
 0x25d   : > { %920 = shalt.err (!%p917_p3)
}
 0x25e   : > { %s921_s4 = scalar_lea.hbm %s1265_s26, 64  ;;  %s925_s7 = scalar_lea.hbm %s1315_s3, 128 }
 0x25f   : > { %p922_p4 = scmp.ne.s32.totalorder %s1265_s26, %s921_s4  ;;  %p926_p9 = scmp.lt.u32.totalorder %s1265_s26, %s1315_s3 }
 0x260   : > { %p927_p10 = scmp.lt.u32.totalorder %s925_s7, %s921_s4  ;;  %p929_p12 = scmp.lt.u32.totalorder %s921_s4, %s1265_s26 }
 0x261   : > { %p923_p7 = pnand %p922_p4, %p1038_p5 }
 0x262   : > { %p928_p11 = por %p927_p10, %p926_p9 }
 0x263   : > { %p924_p8 = pneg %p923_p7 }
 0x264   : > { %p930_p13 = por %p929_p12, %p928_p11 }
 0x266   : > { %p931_p0 = pnand %p930_p13, %p924_p8 }
 0x268   : > { %934 = shalt.err (!%p931_p0)
}
 0x269   : > { %s979_s11 = smov 2  }
 0x26a   : > { %845 = dma.vmem_to_hbm [thread:$0]  (%p1038_p5), %s1267_s20, 64, %s1265_s26, %s1269_s27, %s973_s8, %s973_s8, %s979_s11  }
 0x26b PF: > { %p851_p1 = scmp.ge.s32.totalorder %s969_s15, 2  ;;  %s671_s17 = sand.u32 1, %s957_s12  }
 0x26c   : > { %s672_s19 = scalar_lea.sflag [#allocation3], %s671_s17 }
 0x26d   : > { %p848_p2 = pnand %p851_p1, %p1042_p6 }
 0x26f   : > { %952 = dma.done.wait (!%p848_p2), %s672_s19, 64  }
 0x270   : > { %954 = vsyncadd (!%p848_p2), %s672_s19, 4294967232  ;;  %p13_p3 = scmp.ge.s32.totalorder %s1025_s18, 4   ;;  %s1322_s12 = smov %s961_s13 }
 0x271   : > { %s1323_s13 = smov %s965_s14  ;;  %s1324_s14 = smov %s1036_s21 }
 0x272   : > { %s1325_s15 = smov %s1025_s18  ;;  %15 = sbr.rel (!%p13_p3) target bundleno = 3 (0x3), region = 67 }
 0x279   :  { %677 = vsyncpa [#allocation3], 1 }
 0x27a   :  { %679 = vsyncpa [#allocation3 + $0x1], 1 }

// kernel: encoder_flex_forward.8
= control target key start
LH: loop header
LB: loop body
LE: loop exit
PB: predicated region body
PF: predicated region fallthrough
CT: control target
= control target key end

     0   :  { %s889_s12 = smov 0   ;;  %s1116_s0 = inlined_call_operand.vmem [shape: f32[2,4,4,32], index: 0, kind: input, shape index: {}]   ;;  %s1117_s1 = inlined_call_operand.vmem [shape: f32[288,16], index: 1, kind: input, shape index: {}]   ;;  %s1118_s2 = inlined_call_operand.vmem [shape: f32[16,32], index: 2, kind: input, shape index: {}]   ;;  %s1119_s3 = inlined_call_operand.vmem [shape: f32[2,2,2,32], index: 3, kind: output, shape index: {}]  }
   0x1 LB: > { %s698_s13 = sadd.s32 4294967295, %s860_s12   ;;  %p702_p0 = scmp.ge.s32.totalorder %s860_s12, 1  ;;  %s860_s12 = sphi %s889_s12, %s13_s12  }
   0x2   : > { %p137_p1 = scmp.lt.s32.totalorder %s860_s12, 3 }
   0x4   : > { %p138_p2 = pnand %p702_p0, %p137_p1 }
   0x5   : > { %p161_p3 = scmp.lt.s32.totalorder (!%p138_p2), %s698_s13, 1  ;;  %v184_v0 = vlaneseq (!%p138_p2)  ;;  %vm197_vm0 = vcmask (!%p138_p2), 1040384   ;;  %vm198_vm1 = vcmask (!%p138_p2), 1042434   ;;  %v862_v1 = vmov (!%p138_p2), 1983009808   ;;  %v355_v3 = vld [vmem:[%s1117_s1 + $0x80] sm:$0xff] (!%p138_p2) }
   0x6   : > { %141 = sbr.rel (%p138_p2) target bundleno = 594 (0x252), region = 32  ;;  %v182_v2 = vunpack.c.l.s4 (!%p138_p2), %v862_v1  ;;  %v356_v4 = vld [vmem:[%s1117_s1 + $0x88] sm:$0xff] (!%p138_p2)  ;;  %v339_v7 = vld [vmem:[%s1117_s1] sm:$0xff] (!%p138_p2)  ;;  %vm911_vm2 = vmor (!%p138_p2), %vm197_vm0, %vm198_vm1  ;;  %vm200_vm3 = vcmask (!%p138_p2), 1044484   ;;  %vm202_vm4 = vcmask (!%p138_p2), 1046534   ;;  %s864_s28 = smov (!%p138_p2), 32  }
   0x7   : > { %v185_v5 = vshrl.u32 (!%p138_p2), %v184_v0, 7  ;;  %v783_v6 = vpack.c.bf16 (!%p138_p2), %v356_v4, %v355_v3  ;;  %v340_v8 = vld [vmem:[%s1117_s1 + $0x8] sm:$0xff] (!%p138_p2)  ;;  %v357_v12 = vld [vmem:[%s1117_s1 + $0x90] sm:$0xff] (!%p138_p2)  ;;  %v358_v13 = vld [vmem:[%s1117_s1 + $0x98] sm:$0xff] (!%p138_p2)  ;;  %vm865_vm7 = vmmov (!%p138_p2), 0   ;;  %s867_s10 = smov (!%p138_p2), 96  }
   0x8   : > { %v183_v9 = vunpack.c.0.s8 (!%p138_p2), %v182_v2  ;;  %v785_v11 = vpack.c.bf16 (!%p138_p2), %v340_v8, %v339_v7  ;;  %v787_v14 = vpack.c.bf16 (!%p138_p2), %v358_v13, %v357_v12  ;;  %v341_v15 = vld [vmem:[%s1117_s1 + $0x10] sm:$0xff] (!%p138_p2)  ;;  %v342_v16 = vld [vmem:[%s1117_s1 + $0x18] sm:$0xff] (!%p138_p2)  ;;  %v359_v17 = vld [vmem:[%s1117_s1 + $0xa0] sm:$0xff] (!%p138_p2)  ;;  %s868_s11 = smov (!%p138_p2), 64   ;;  %vm330_vm8 = vcmask (!%p138_p2), 261120  }
   0x9   : > { %784 = vmatprep.subr.bf16.mxu0 (!%p138_p2), %v783_v6  ;;  %v789_v19 = vpack.c.bf16 (!%p138_p2), %v342_v16, %v341_v15  ;;  %v360_v20 = vld [vmem:[%s1117_s1 + $0xa8] sm:$0xff] (!%p138_p2)  ;;  %v343_v21 = vld [vmem:[%s1117_s1 + $0x20] sm:$0xff] (!%p138_p2)  ;;  %v361_v31 = vld [vmem:[%s1117_s1 + $0xb0] sm:$0xff] (!%p138_p2)  ;;  %vm332_vm9 = vcmask (!%p138_p2), 523264   ;;  %vm334_vm10 = vcmask (!%p138_p2), 785408   ;;  %vm555_vm11 = vcmask (!%p138_p2), 130048  }
   0xa   : > { %v934_v18 = vsub.s32 (!%p138_p2), %v183_v9, %v185_v5  ;;  %786 = vmatpush3.bf16.msra.mxu0 (!%p138_p2), %v785_v11  ;;  %v344_v22 = vld [vmem:[%s1117_s1 + $0x28] sm:$0xff] (!%p138_p2)  ;;  %v791_v26 = vpack.c.bf16 (!%p138_p2), %v360_v20, %v359_v17  ;;  %v362_v33 = vld [vmem:[%s1117_s1 + $0xb8] sm:$0xff] (!%p138_p2)  ;;  %vm201_vm5 = vmor (!%p138_p2), %vm911_vm2, %vm200_vm3  ;;  %vm640_vm12 = vcmask (!%p138_p2), 254976  }
   0xb   : > { %788 = vmatprep.subr.bf16.mxu0 (!%p138_p2), %v787_v14  ;;  %v793_v37 = vpack.c.bf16 (!%p138_p2), %v344_v22, %v343_v21  ;;  %v345_v38 = vld [vmem:[%s1117_s1 + $0x30] sm:$0xff] (!%p138_p2)  ;;  %v346_v39 = vld [vmem:[%s1117_s1 + $0x38] sm:$0xff] (!%p138_p2)  ;;  %v795_v42 = vpack.c.bf16 (!%p138_p2), %v362_v33, %v361_v31  ;;  %vm983_vm6 = vmor (!%p138_p2), %vm201_vm5, %vm202_vm4 }
   0xc   : > { %v797_v51 = vpack.c.bf16 (!%p138_p2), %v346_v39, %v345_v38  ;;  %v363_v56 = vld [vmem:[%s1117_s1 + $0xc0] sm:$0xff] (!%p138_p2)  ;;  %v364_v57 = vld [vmem:[%s1117_s1 + $0xc8] sm:$0xff] (!%p138_p2)  ;;  %v365_v4 = vld [vmem:[%s1117_s1 + $0xd0] sm:$0xff] (!%p138_p2) }
   0xd   : > { %s1125_s13 = smov (!%p161_p3, %s698_s13), 1  ;;  %v347_v62 = vld [vmem:[%s1117_s1 + $0x40] sm:$0xff]  ;;  %v348_v63 = vld [vmem:[%s1117_s1 + $0x48] sm:$0xff]  ;;  %v366_v5 = vld [vmem:[%s1117_s1 + $0xd8] sm:$0xff]  ;;  %v799_v9 = vpack.c.bf16 %v364_v57, %v363_v56 }
   0xe   : > { %s720_s26 = sshll.u32 %s1125_s13, 4  ;;  %790 = vmatpush3.bf16.msra.mxu0 %v789_v19  ;;  %v371_v10 = vld [vmem:[%s1117_s1 + $0x100] sm:$0xff]  ;;  %v372_v11 = vld [vmem:[%s1117_s1 + $0x108] sm:$0xff]  ;;  %v801_v14 = vpack.c.bf16 %v348_v63, %v347_v62  ;;  %v349_v15 = vld [vmem:[%s1117_s1 + $0x50] sm:$0xff]  ;;  %v803_v22 = vpack.c.bf16 %v366_v5, %v365_v4  ;;  %s721_s22 = sshll.u32 %s1125_s13, 2 }
   0xf   : > { %s165_s8 = scalar_lea.vmem %s1116_s0, %s720_s26  ;;  %792 = vmatprep.subr.bf16.mxu0 %v791_v26  ;;  %v350_v16 = vld [vmem:[%s1117_s1 + $0x58] sm:$0xff]  ;;  %v367_v17 = vld [vmem:[%s1117_s1 + $0xe0] sm:$0xff]  ;;  %v368_v26 = vld [vmem:[%s1117_s1 + $0xe8] sm:$0xff]  ;;  %v816_v31 = vpack.c.bf16 %v372_v11, %v371_v10  ;;  %s170_s25 = scalar_lea.vmem %s1119_s3, %s721_s22 }
  0x10   : > { %v945_v23 = vld [vmem:[%s165_s8] sm:$0xf]  ;;  %v947_v24 = vld [vmem:[%s165_s8 + $0x4] sm:$0xf]  ;;  %v949_v25 = vld [vmem:[%s165_s8 + $0x8] sm:$0xf]  ;;  %v807_v38 = vpack.c.bf16 %v368_v26, %v367_v17 }
  0x11   : > { %v175_v27 = vmax.f32 %v945_v23, 0.0  ;;  %v953_v28 = vmax.f32 %v947_v24, 0.0  ;;  %v177_v29 = vmax.f32 %v949_v25, 0.0  ;;  %v174_v30 = vld [vmem:[%s165_s8 + $0xc] sm:$0xf] }
  0x12   : > { %v178_v32 = vmax.f32 %v174_v30, 0.0  ;;  %794 = vmatpush3.bf16.msra.mxu0 %v793_v37  ;;  %v374_v30 = vld [vmem:[%s1117_s1 + $0x118] sm:$0xff]  ;;  %v805_v37 = vpack.c.bf16 %v350_v16, %v349_v15  ;;  %v519_v5 = vld [vmem:[%s1118_s2 + $0x8] sm:$0xff]  ;;  %v536_v15 = vrot.slane %v949_v25, %v934_v18 }
  0x13   : > { %v187_v34 = vrot.slane %v175_v27, %v934_v18  ;;  %v195_v35 = vrot.slane %v953_v28, %v934_v18  ;;  %v971_v36 = vrot.slane %v177_v29, %v934_v18  ;;  %v269_v61 = vcombine.low %v953_v28, %v177_v29  ;;  %796 = vmatprep.subr.bf16.mxu0 %v795_v42  ;;  %v351_v42 = vld [vmem:[%s1117_s1 + $0x60] sm:$0xff] }
  0x14   : > { %v980_v40 = vrot.slane %v178_v32, %v934_v18  ;;  %v300_v41 = vcombine.low %v177_v29, %v178_v32  ;;  %v373_v29 = vld [vmem:[%s1117_s1 + $0x110] sm:$0xff]  ;;  %v537_v17 = vcombine.high %v536_v15, %v536_v15 }
  0x15   : > { %v188_v43 = vcombine.high %v187_v34, %v187_v34  ;;  %v196_v44 = vcombine.high %v195_v35, %v195_v35  ;;  %v707_v45 = vrot.slane %v187_v34, 9  ;;  %v708_v46 = vrot.slane %v195_v35, 9 }
  0x16   : > { %v712_v48 = vcombine.high %v195_v35, %v971_v36  ;;  %v711_v49 = vcombine.high %v187_v34, %v195_v35  ;;  %v220_v50 = vcombine.high %v971_v36, %v971_v36  ;;  %v709_v54 = vrot.slane %v971_v36, 9  ;;  %798 = vmatpush3.bf16.msra.mxu0 %v797_v51  ;;  %v354_v51 = vld [vmem:[%s1117_s1 + $0x78] sm:$0xff] }
  0x17   : > { %v206_v52 = vrot.slane %v188_v43, 7  ;;  %v210_v53 = vrot.slane %v196_v44, 7  ;;  %v233_v55 = vcombine.high %v980_v40, %v980_v40  ;;  %v307_v58 = vrot.slane %v300_v41, %v934_v18  ;;  %800 = vmatprep.subr.bf16.mxu0 %v799_v9  ;;  %v352_v43 = vld [vmem:[%s1117_s1 + $0x68] sm:$0xff] }
  0x18   : > { %v223_v59 = vrot.slane %v220_v50, 7  ;;  %v710_v60 = vrot.slane %v980_v40, 9  ;;  %v296_v2 = vrot.slane %v712_v48, %v934_v18  ;;  %v265_v7 = vrot.slane %v711_v49, %v934_v18  ;;  %v353_v50 = vld [vmem:[%s1117_s1 + $0x70] sm:$0xff] }
  0x19   : > { %v207_v0 = vsel %vm983_vm6, %v707_v45, %v206_v52  ;;  %v1012_v1 = vsel %vm983_vm6, %v708_v46, %v210_v53  ;;  %v236_v3 = vrot.slane %v233_v55, 7  ;;  %v276_v20 = vrot.slane %v269_v61, %v934_v18  ;;  %v369_v45 = vld [vmem:[%s1117_s1 + $0xf0] sm:$0xff]  ;;  %v370_v46 = vld [vmem:[%s1117_s1 + $0xf8] sm:$0xff] }
  0x1a   : > { %v247_v6 = vcombine.low %v207_v0, %v1012_v1  ;;  %v1025_v8 = vsel %vm983_vm6, %v709_v54, %v223_v59  ;;  %v844_v33 = vpack.i.bf16 %v265_v7, %v307_v58  ;;  %v863_v35 = vmov 0.0|0.0   ;;  %802 = vmatpush3.bf16.msra.mxu0 %v801_v14 }
  0x1b   : > { %v237_v12 = vsel %vm983_vm6, %v710_v60, %v236_v3  ;;  %v280_v13 = vcombine.low %v1012_v1, %v1025_v8  ;;  %815 = vmatprep.subr.bf16.mxu1 %v863_v35  ;;  %v819_v39 = vpack.c.bf16 %v374_v30, %v373_v29  ;;  %804 = vmatprep.subr.bf16.mxu0 %v803_v22  ;;  %v866_v48 = vmov 0.0   ;;  %v518_v1 = vld [vmem:[%s1118_s2] sm:$0xff] }
  0x1c   : > { %v254_v19 = vrot.slane %v247_v6, %v934_v18  ;;  %v311_v21 = vcombine.low %v1025_v8, %v237_v12  ;;  %817 = vmatpush3.bf16.msra.mxu1 %v816_v31  ;;  %v238_v44 = vcombine.low %v175_v27, %v953_v28  ;;  %773 = vmatprep.mubr.msk.f32.mxu1 %vm865_vm7, %v866_v48  ;;  %v544_v22 = vrot.slane %v537_v17, 7 }
  0x1d   : > { %818 = vmatprep.subr.bf16.mxu1 %v863_v35  ;;  %v713_v49 = vcombine.high %v971_v36, %v980_v40  ;;  %v809_v23 = vpack.c.bf16 %v352_v43, %v351_v42  ;;  %v811_v28 = vpack.c.bf16 %v370_v46, %v369_v45  ;;  %v813_v36 = vpack.c.bf16 %v354_v51, %v353_v50 }
  0x1e   : > { %v839_v32 = vpack.i.bf16 %v254_v19, %v296_v2  ;;  %v318_v34 = vrot.slane %v311_v21, %v934_v18  ;;  %806 = vmatpush3.bf16.msra.mxu0 %v805_v37  ;;  %v287_v55 = vrot.slane %v280_v13, %v934_v18  ;;  %v245_v56 = vrot.slane %v238_v44, %v934_v18 }
  0x1f   : > { %v329_v27 = vrot.slane %v713_v49, %v934_v18  ;;  %808 = vmatprep.subr.bf16.mxu0 %v807_v38  ;;  %v822_v6 = vpack.c.bf16 %v519_v5, %v518_v1  ;;  %v528_v14 = vrot.slane %v947_v24, %v934_v18  ;;  %v716_v21 = vrot.slane %v536_v15, 9 }
  0x20   : > { %840 = vrot.lane.b32.xlu0 %v839_v32, %s864_s28  ;;  %v849_v41 = vpack.i.bf16 %v276_v20, %v318_v34  ;;  %820 = vmatpush3.bf16.msra.mxu1 %v819_v39 }
  0x21   : > { %821 = vmatprep.subr.bf16.mxu1 %v863_v35  ;;  %v529_v16 = vcombine.high %v528_v14, %v528_v14  ;;  %v715_v19 = vrot.slane %v528_v14, 9  ;;  %v545_v29 = vsel %vm983_vm6, %v716_v21, %v544_v22 }
  0x22   : > { %850 = vrot.lane.b32.xlu1 %v849_v41, %s867_s10  ;;  %810 = vmatpush3.bf16.msra.mxu0 %v809_v23 }
  0x23   : > { %774 = vmatmul.mubr.msk.f32.vlgmr.msra.gmra.mrb[0].mxu1 %vm330_vm8, %v329_v27  ;;  %812 = vmatprep.subr.bf16.mxu0 %v811_v28  ;;  %v540_v20 = vrot.slane %v529_v16, 7 }
  0x24   : > { %845 = vrot.lane.b32.xlu0 %v844_v33, %s868_s11  ;;  %780 = vmatprep.mubr.msk.f32.mxu1 %vm865_vm7, %v866_v48 }
  0x25   : > { %823 = vmatpush3.bf16.msra.mxu1 %v822_v6  ;;  %v541_v26 = vsel %vm983_vm6, %v715_v19, %v540_v20 }
  0x26   : > { %814 = vmatpush3.bf16.msra.mxu0 %v813_v36  ;;  %v546_v30 = vcombine.low %v541_v26, %v545_v29 }
  0x28   : > { %v553_v31 = vrot.slane %v546_v30, %v934_v18 }
  0x92   : > { %v841_v40 = vpop.permute.xlu0 %840 }
  0x93   : > { %v843_v52 = vunpack.i.h.bf16 %v841_v40  ;;  %v842_v53 = vunpack.i.l.bf16 %v841_v40 }
  0x94   : > { %v851_v54 = vpop.permute.xlu1 %850 }
  0x95   : > { %v853_v58 = vunpack.i.h.bf16 %v851_v54  ;;  %v852_v59 = vunpack.i.l.bf16 %v851_v54  ;;  %v336_v62 = vsel %vm330_vm8, %v287_v55, %v842_v53  ;;  %v331_v63 = vsel %vm330_vm8, %v245_v56, %v843_v52 }
  0x96   : > { %v846_v57 = vpop.permute.xlu0 %845 }
  0x97   : > { %v848_v60 = vunpack.i.h.bf16 %v846_v57  ;;  %v847_v61 = vunpack.i.l.bf16 %v846_v57 }
  0x99   : > { %v337_v0 = vsel %vm332_vm9, %v336_v62, %v847_v61  ;;  %v333_v2 = vsel %vm332_vm9, %v331_v63, %v848_v60 }
  0x9a   : > { %v338_v3 = vsel %vm334_vm10, %v337_v0, %v852_v59  ;;  %v335_v4 = vsel %vm334_vm10, %v333_v2, %v853_v58 }
  0x9b   : > { %441 = vmatprep.mubr.f32.mxu0 %v338_v3 }
  0x9c   : > { %442 = vmatmul.mubr.f32.vlgmr.msra.gmra.mrb[0].mxu0 %v335_v4 }
  0xf6   : > { %v513_v7 = vpop.f32.mrb[0].mxu1 }
  0xf7   : > { %v775_v8 = vpop.f32.mrb[1].mxu1 }
 0x16f   : > { %v754_v9 = vpop.f32.mrb[0].mxu0 }
 0x170   : > { %v755_v10 = vpop.f32.mrb[1].mxu0 }
 0x171   : > { %v756_v11 = vadd.f32 %v755_v10, %v754_v9 }
 0x173   : > { %v514_v12 = vadd.f32 %v756_v11, %v513_v7 }
 0x175   : > { %v517_v13 = vmax.f32 %v514_v12, 0.0 }
 0x177   : > { %781 = vmatmul.mubr.msk.f32.vlgmr.msra.gmra.mrb[2].mxu1 %vm555_vm11, %v517_v13 }
 0x24a   : > { %v625_v24 = vpop.f32.mrb[2].mxu1 }
 0x24b   : > { %v626_v32 = vadd.f32 %v625_v24, %v553_v31  ;;  %v782_v33 = vpop.f32.mrb[3].mxu1 }
 0x24d   : > { %v636_v25 = vrot.slane %v626_v32, %v934_v18 }
 0x24f   : > { %v637_v34 = vcombine.high %v636_v25, %v636_v25  ;;  %641 = vst.msk [vmem:[%s170_s25] sm:$0x3] %vm640_vm12, %v636_v25 }
 0x251   : > { %642 = vst.msk [vmem:[%s170_s25 + $0x2] sm:$0x3] %vm640_vm12, %v637_v34 }
 0x252 PF: > { %s13_s12 = sadd.s32 1, %s860_s12  }
 0x253   : > { %p10_p4 = scmp.ge.s32.totalorder %s13_s12, 4  }
 0x255   :  { %12 = sbr.rel (!%p10_p4) target bundleno = 1 (0x1), region = 62 }

</bundles_post_ra>
